<compile_context>
chip_gen: v5e
topology: v5e:2x2
jax: 0.10.0
libtpu: 0.0.40
codegen_flags: <defaults>
</compile_context>

<pallas_src>
import jax
import jax.numpy as jnp
from jax.experimental import pallas as pl
from jax.experimental.pallas import tpu as pltpu

IN_DIM = 784
H1, H2, H3, OUT = 392, 196, 98, 10
H1P, H2P, H3P, OUTP = 512, 256, 128, 128   # lane-aligned (multiple-of-128) padded dims

_MIB = 1024 * 1024
_NEG_BIG = -1e30   # finite "minus infinity" for padded logit columns (avoids inf-inf NaN)


def _round_up(n, m):
    return ((n + m - 1) // m) * m


def _pad_to(a, shape, value=0.0):
    pads = [(0, s - d) for d, s in zip(a.shape, shape)]
    return jnp.pad(a, pads, constant_values=value)


def mlp_kernel(x_ref,
               w1_ref, b1_ref,
               w2_ref, b2_ref,
               w3_ref, b3_ref,
               w4_ref, b4_ref,
               out_ref):
    # x already bf16 (cast once at input-prep time); f32 accumulation on MXU.
    x = x_ref[...]

    h = jnp.dot(x, w1_ref[...], preferred_element_type=jnp.float32) + b1_ref[...]
    h = jnp.maximum(h, 0.0)

    h = jnp.dot(h.astype(jnp.bfloat16), w2_ref[...],
                preferred_element_type=jnp.float32) + b2_ref[...]
    h = jnp.maximum(h, 0.0)

    h = jnp.dot(h.astype(jnp.bfloat16), w3_ref[...],
                preferred_element_type=jnp.float32) + b3_ref[...]
    h = jnp.maximum(h, 0.0)

    logits = jnp.dot(h.astype(jnp.bfloat16), w4_ref[...],
                     preferred_element_type=jnp.float32) + b4_ref[...]

    # Padded columns hold bias -1e30: exp underflows to exactly 0, so the max
    # and log-sum-exp over all 128 lanes equal those over the 10 real classes.
    # -> lane-dense softmax + lane-dense (TB, 128) store, no in-kernel slice.
    m = jnp.max(logits, axis=-1, keepdims=True)
    shifted = logits - m
    lse = jnp.log(jnp.sum(jnp.exp(shifted), axis=-1, keepdims=True))
    out_ref[...] = (shifted - lse).astype(out_ref.dtype)


def prepare_params(params):
    """One-time prep: transpose torch (out, in) -> (in, out), zero-pad to lane
    multiples, cast weights to bf16 (biases stay f32).  fc4's padded bias
    columns are set to -1e30 so the lane-dense log_softmax ignores them."""
    (w1, b1), (w2, b2), (w3, b3), (w4, b4) = params
    w1p = _pad_to(w1.T, (IN_DIM, H1P)).astype(jnp.bfloat16)
    b1p = _pad_to(b1.reshape(1, -1), (1, H1P)).astype(jnp.float32)
    w2p = _pad_to(w2.T, (H1P, H2P)).astype(jnp.bfloat16)
    b2p = _pad_to(b2.reshape(1, -1), (1, H2P)).astype(jnp.float32)
    w3p = _pad_to(w3.T, (H2P, H3P)).astype(jnp.bfloat16)
    b3p = _pad_to(b3.reshape(1, -1), (1, H3P)).astype(jnp.float32)
    w4p = _pad_to(w4.T, (H3P, OUTP)).astype(jnp.bfloat16)
    b4p = _pad_to(b4.reshape(1, -1), (1, OUTP), value=_NEG_BIG).astype(jnp.float32)
    return (w1p, b1p, w2p, b2p, w3p, b3p, w4p, b4p)


def prepare_input(x_nchw):
    """Flatten NCHW images to (B, 784) and cast to bf16 once (halves x DMA)."""
    B = x_nchw.shape[0]
    return x_nchw.reshape(B, IN_DIM).astype(jnp.bfloat16)


def _select_config():
    """(tb_cap, vmem_limit_bytes, num_cores) per TPU generation."""
    try:
        vmem_bytes = int(pltpu.get_tpu_info().vmem_capacity_bytes)
    except Exception:
        vmem_bytes = 64 * _MIB            # conservative (v7x-like) fallback
    if vmem_bytes <= 64 * _MIB:
        # v7x: 64 MiB VMEM per TC, 2 TCs per chip -> tighter scoped limit,
        # and make sure the parallel grid has work for both cores.
        return 2048, 48 * _MIB, 2
    # v5e / v6e: 128 MiB VMEM, single TensorCore.
    return 2048, 64 * _MIB, 1


def network_forward(x2d_bf16, prepared_params):
    """x2d_bf16: (B, 784) bfloat16 (see prepare_input).
    Returns (B, 10) float32 log-probabilities."""
    B = x2d_bf16.shape[0]
    tb_cap, vmem_limit, num_cores = _select_config()

    # Batch tile: multiple of 8 (sublane granularity), capped by VMEM budget,
    # and on dual-TC parts additionally capped so grid >= num_cores steps.
    TB = min(tb_cap, _round_up(max(B, 1), 8))
    if num_cores > 1:
        TB = min(TB, _round_up(-(-B // num_cores), 8))
    num_steps = -(-B // TB)   # ceil(B / TB); ragged last block, no jnp.pad of x

    def resident(shape):
        # Constant block index -> fetched once, VMEM-resident across the grid.
        return pl.BlockSpec(shape, lambda i: (0, 0))

    out = pl.pallas_call(
        mlp_kernel,
        out_shape=jax.ShapeDtypeStruct((B, OUTP), jnp.float32),
        grid=(num_steps,),
        in_specs=[
            pl.BlockSpec((TB, IN_DIM), lambda i: (i, 0)),   # x (pipelined over batch)
            resident((IN_DIM, H1P)), resident((1, H1P)),    # fc1
            resident((H1P, H2P)),    resident((1, H2P)),    # fc2
            resident((H2P, H3P)),    resident((1, H3P)),    # fc3
            resident((H3P, OUTP)),   resident((1, OUTP)),   # fc4
        ],
        out_specs=pl.BlockSpec((TB, OUTP), lambda i: (i, 0)),  # lane-dense store
        compiler_params=pltpu.CompilerParams(
            dimension_semantics=("parallel",),
            vmem_limit_bytes=vmem_limit,
        ),
    )(x2d_bf16, *prepared_params)

    # Drop the padded class columns (tiny slice in the wrapper).
    return out[:, :OUT]


def init_params(key):
    """Deterministic init matching the nn.Linear shapes (weight: (out, in))."""
    dims = [(H1, IN_DIM), (H2, H1), (H3, H2), (OUT, H3)]
    params = []
    for (out_d, in_d) in dims:
        key, kw, kb = jax.random.split(key, 3)
        bound = 1.0 / jnp.sqrt(in_d)
        w = jax.random.uniform(kw, (out_d, in_d), jnp.float32, -bound, bound)
        b = jax.random.uniform(kb, (out_d,), jnp.float32, -bound, bound)
        params.append((w, b))
    return params


def reference_forward(x_nchw, params):
    """Pure-JAX f32 reference of the PyTorch forward (for correctness check)."""
    x = x_nchw.reshape(x_nchw.shape[0], IN_DIM)
    for i, (w, b) in enumerate(params):
        x = x @ w.T + b
        if i < 3:
            x = jnp.maximum(x, 0.0)
    return jax.nn.log_softmax(x, axis=-1)


if __name__ == "__main__":
    key = jax.random.PRNGKey(0)
    key, kx = jax.random.split(key)

    B = 2
    x = jax.random.normal(kx, (B, 1, 28, 28), jnp.float32)  # NCHW, like Fashion-MNIST
    params = init_params(key)
    prepared = prepare_params(params)

    out = network_forward(prepare_input(x), prepared)
    out = jax.block_until_ready(out)

    assert out.shape == (B, OUT)

    # sanity: log-probs should (approximately) exponentiate-sum to 1 per row
    row_sums = jnp.sum(jnp.exp(out), axis=-1)
    assert bool(jnp.all(jnp.abs(row_sums - 1.0) < 1e-3))

    # correctness vs f32 reference (loose tolerance: bf16 matmul operands)
    ref = reference_forward(x, params)
    assert bool(jnp.max(jnp.abs(out - ref)) < 5e-2)

    print("KERNEL_OK")
</pallas_src>

<mosaic_0001>
module attributes {stable_mosaic.version = 11 : i64} {
  func.func @mlp_kernel(%arg0: i32, %arg1: memref<8x784xbf16, #tpu.memory_space<vmem>>, %arg2: memref<784x512xbf16, #tpu.memory_space<vmem>>, %arg3: memref<1x512xf32, #tpu.memory_space<vmem>>, %arg4: memref<512x256xbf16, #tpu.memory_space<vmem>>, %arg5: memref<1x256xf32, #tpu.memory_space<vmem>>, %arg6: memref<256x128xbf16, #tpu.memory_space<vmem>>, %arg7: memref<1x128xf32, #tpu.memory_space<vmem>>, %arg8: memref<128x128xbf16, #tpu.memory_space<vmem>>, %arg9: memref<1x128xf32, #tpu.memory_space<vmem>>, %arg10: memref<8x128xf32, #tpu.memory_space<vmem>>) attributes {dimension_semantics = [#tpu.dimension_semantics<parallel>], iteration_bounds = array<i64: 1>, scalar_prefetch = 0 : i64, scratch_operands = 0 : i64, tpu.core_type = #tpu.core_type<tc>, window_params = [{transform_indices = @transform_0, window_bounds = array<i64: 8, 784>}, {pipeline_mode = #tpu.pipeline_mode<synchronous>, transform_indices = @transform_1, window_bounds = array<i64: 784, 512>}, {pipeline_mode = #tpu.pipeline_mode<synchronous>, transform_indices = @transform_2, window_bounds = array<i64: 1, 512>}, {pipeline_mode = #tpu.pipeline_mode<synchronous>, transform_indices = @transform_3, window_bounds = array<i64: 512, 256>}, {pipeline_mode = #tpu.pipeline_mode<synchronous>, transform_indices = @transform_4, window_bounds = array<i64: 1, 256>}, {pipeline_mode = #tpu.pipeline_mode<synchronous>, transform_indices = @transform_5, window_bounds = array<i64: 256, 128>}, {pipeline_mode = #tpu.pipeline_mode<synchronous>, transform_indices = @transform_6, window_bounds = array<i64: 1, 128>}, {pipeline_mode = #tpu.pipeline_mode<synchronous>, transform_indices = @transform_7, window_bounds = array<i64: 128, 128>}, {pipeline_mode = #tpu.pipeline_mode<synchronous>, transform_indices = @transform_8, window_bounds = array<i64: 1, 128>}, {transform_indices = @transform_9, window_bounds = array<i64: 8, 128>}]} {
    %c0 = arith.constant 0 : index
    %c0_0 = arith.constant 0 : index
    %0 = vector.load %arg1[%c0, %c0_0] : memref<8x784xbf16, #tpu.memory_space<vmem>>, vector<8x784xbf16>
    %c0_1 = arith.constant 0 : index
    %c0_2 = arith.constant 0 : index
    %1 = vector.load %arg2[%c0_1, %c0_2] : memref<784x512xbf16, #tpu.memory_space<vmem>>, vector<784x512xbf16>
    %cst = arith.constant dense<0.000000e+00> : vector<8x512xf32>
    %2 = tpu.matmul %0, %1, %cst {dimension_numbers = #tpu.dot_dimension_numbers<[1], [0], [0], [1], [0, 0, 1, 1], [], []>} : vector<8x784xbf16>, vector<784x512xbf16>, vector<8x512xf32> -> vector<8x512xf32>
    %c0_3 = arith.constant 0 : index
    %c0_4 = arith.constant 0 : index
    %3 = vector.load %arg3[%c0_3, %c0_4] : memref<1x512xf32, #tpu.memory_space<vmem>>, vector<1x512xf32>
    %4 = vector.broadcast %3 : vector<1x512xf32> to vector<8x512xf32>
    %5 = arith.addf %2, %4 : vector<8x512xf32>
    %cst_5 = arith.constant 0.000000e+00 : f32
    %6 = vector.broadcast %cst_5 : f32 to vector<8x512xf32>
    %7 = arith.maximumf %5, %6 : vector<8x512xf32>
    %8 = arith.truncf %7 : vector<8x512xf32> to vector<8x512xbf16>
    %c0_6 = arith.constant 0 : index
    %c0_7 = arith.constant 0 : index
    %9 = vector.load %arg4[%c0_6, %c0_7] : memref<512x256xbf16, #tpu.memory_space<vmem>>, vector<512x256xbf16>
    %cst_8 = arith.constant dense<0.000000e+00> : vector<8x256xf32>
    %10 = tpu.matmul %8, %9, %cst_8 {dimension_numbers = #tpu.dot_dimension_numbers<[1], [0], [0], [1], [0, 0, 1, 1], [], []>} : vector<8x512xbf16>, vector<512x256xbf16>, vector<8x256xf32> -> vector<8x256xf32>
    %c0_9 = arith.constant 0 : index
    %c0_10 = arith.constant 0 : index
    %11 = vector.load %arg5[%c0_9, %c0_10] : memref<1x256xf32, #tpu.memory_space<vmem>>, vector<1x256xf32>
    %12 = vector.broadcast %11 : vector<1x256xf32> to vector<8x256xf32>
    %13 = arith.addf %10, %12 : vector<8x256xf32>
    %cst_11 = arith.constant 0.000000e+00 : f32
    %14 = vector.broadcast %cst_11 : f32 to vector<8x256xf32>
    %15 = arith.maximumf %13, %14 : vector<8x256xf32>
    %16 = arith.truncf %15 : vector<8x256xf32> to vector<8x256xbf16>
    %c0_12 = arith.constant 0 : index
    %c0_13 = arith.constant 0 : index
    %17 = vector.load %arg6[%c0_12, %c0_13] : memref<256x128xbf16, #tpu.memory_space<vmem>>, vector<256x128xbf16>
    %cst_14 = arith.constant dense<0.000000e+00> : vector<8x128xf32>
    %18 = tpu.matmul %16, %17, %cst_14 {dimension_numbers = #tpu.dot_dimension_numbers<[1], [0], [0], [1], [0, 0, 1, 1], [], []>} : vector<8x256xbf16>, vector<256x128xbf16>, vector<8x128xf32> -> vector<8x128xf32>
    %c0_15 = arith.constant 0 : index
    %c0_16 = arith.constant 0 : index
    %19 = vector.load %arg7[%c0_15, %c0_16] : memref<1x128xf32, #tpu.memory_space<vmem>>, vector<1x128xf32>
    %20 = vector.broadcast %19 : vector<1x128xf32> to vector<8x128xf32>
    %21 = arith.addf %18, %20 : vector<8x128xf32>
    %cst_17 = arith.constant 0.000000e+00 : f32
    %22 = vector.broadcast %cst_17 : f32 to vector<8x128xf32>
    %23 = arith.maximumf %21, %22 : vector<8x128xf32>
    %24 = arith.truncf %23 : vector<8x128xf32> to vector<8x128xbf16>
    %c0_18 = arith.constant 0 : index
    %c0_19 = arith.constant 0 : index
    %25 = vector.load %arg8[%c0_18, %c0_19] : memref<128x128xbf16, #tpu.memory_space<vmem>>, vector<128x128xbf16>
    %cst_20 = arith.constant dense<0.000000e+00> : vector<8x128xf32>
    %26 = tpu.matmul %24, %25, %cst_20 {dimension_numbers = #tpu.dot_dimension_numbers<[1], [0], [0], [1], [0, 0, 1, 1], [], []>} : vector<8x128xbf16>, vector<128x128xbf16>, vector<8x128xf32> -> vector<8x128xf32>
    %c0_21 = arith.constant 0 : index
    %c0_22 = arith.constant 0 : index
    %27 = vector.load %arg9[%c0_21, %c0_22] : memref<1x128xf32, #tpu.memory_space<vmem>>, vector<1x128xf32>
    %28 = vector.broadcast %27 : vector<1x128xf32> to vector<8x128xf32>
    %29 = arith.addf %26, %28 : vector<8x128xf32>
    %cst_23 = arith.constant dense<0xFF800000> : vector<8xf32>
    %30 = vector.multi_reduction <maximumf>, %29, %cst_23 [1] : vector<8x128xf32> to vector<8xf32>
    %31 = vector.shape_cast %30 : vector<8xf32> to vector<8x1xf32>
    %32 = vector.broadcast %31 : vector<8x1xf32> to vector<8x128xf32>
    %33 = arith.subf %29, %32 : vector<8x128xf32>
    %34 = math.exp %33 : vector<8x128xf32>
    %cst_24 = arith.constant dense<0.000000e+00> : vector<8xf32>
    %35 = vector.multi_reduction <add>, %34, %cst_24 [1] : vector<8x128xf32> to vector<8xf32>
    %36 = vector.shape_cast %35 : vector<8xf32> to vector<8x1xf32>
    %37 = math.log %36 : vector<8x1xf32>
    %38 = vector.broadcast %37 : vector<8x1xf32> to vector<8x128xf32>
    %39 = arith.subf %33, %38 : vector<8x128xf32>
    %c0_25 = arith.constant 0 : index
    %c0_26 = arith.constant 0 : index
    %40 = vector.load %arg10[%c0_25, %c0_26] : memref<8x128xf32, #tpu.memory_space<vmem>>, vector<8x128xf32>
    tpu.vector_store %arg10[%c0_25, %c0_26], %39 {strides = array<i32>} : memref<8x128xf32, #tpu.memory_space<vmem>>, vector<8x128xf32>,
    return
  }
  func.func @transform_0(%arg0: i32) -> (i32, i32) {
    %c0_i32 = arith.constant 0 : i32
    %c0_i32_0 = arith.constant 0 : i32
    return %arg0, %c0_i32 : i32, i32
  }
  func.func @transform_1(%arg0: i32) -> (i32, i32) {
    %c0_i32 = arith.constant 0 : i32
    %c0_i32_0 = arith.constant 0 : i32
    %c0_i32_1 = arith.constant 0 : i32
    return %c0_i32, %c0_i32_0 : i32, i32
  }
  func.func @transform_2(%arg0: i32) -> (i32, i32) {
    %c0_i32 = arith.constant 0 : i32
    %c0_i32_0 = arith.constant 0 : i32
    %c0_i32_1 = arith.constant 0 : i32
    return %c0_i32, %c0_i32_0 : i32, i32
  }
  func.func @transform_3(%arg0: i32) -> (i32, i32) {
    %c0_i32 = arith.constant 0 : i32
    %c0_i32_0 = arith.constant 0 : i32
    %c0_i32_1 = arith.constant 0 : i32
    return %c0_i32, %c0_i32_0 : i32, i32
  }
  func.func @transform_4(%arg0: i32) -> (i32, i32) {
    %c0_i32 = arith.constant 0 : i32
    %c0_i32_0 = arith.constant 0 : i32
    %c0_i32_1 = arith.constant 0 : i32
    return %c0_i32, %c0_i32_0 : i32, i32
  }
  func.func @transform_5(%arg0: i32) -> (i32, i32) {
    %c0_i32 = arith.constant 0 : i32
    %c0_i32_0 = arith.constant 0 : i32
    %c0_i32_1 = arith.constant 0 : i32
    return %c0_i32, %c0_i32_0 : i32, i32
  }
  func.func @transform_6(%arg0: i32) -> (i32, i32) {
    %c0_i32 = arith.constant 0 : i32
    %c0_i32_0 = arith.constant 0 : i32
    %c0_i32_1 = arith.constant 0 : i32
    return %c0_i32, %c0_i32_0 : i32, i32
  }
  func.func @transform_7(%arg0: i32) -> (i32, i32) {
    %c0_i32 = arith.constant 0 : i32
    %c0_i32_0 = arith.constant 0 : i32
    %c0_i32_1 = arith.constant 0 : i32
    return %c0_i32, %c0_i32_0 : i32, i32
  }
  func.func @transform_8(%arg0: i32) -> (i32, i32) {
    %c0_i32 = arith.constant 0 : i32
    %c0_i32_0 = arith.constant 0 : i32
    %c0_i32_1 = arith.constant 0 : i32
    return %c0_i32, %c0_i32_0 : i32, i32
  }
  func.func @transform_9(%arg0: i32) -> (i32, i32) {
    %c0_i32 = arith.constant 0 : i32
    %c0_i32_0 = arith.constant 0 : i32
    return %arg0, %c0_i32 : i32, i32
  }
}

</mosaic_0001>

<bundles_post_ra>
// kernel: tpu_custom_call.1
= control target key start
LH: loop header
LB: loop body
LE: loop exit
PB: predicated region body
PF: predicated region fallthrough
CT: control target
= control target key end

     0   :  { %14 = vsyncpa [#allocation3], 0  ;;  %s4280_s0 = inlined_call_operand.hbm [shape: bf16[2,784], index: 0, kind: input, shape index: {}]   ;;  %s4281_s1 = inlined_call_operand.hbm [shape: bf16[784,512], index: 1, kind: input, shape index: {}]   ;;  %s4282_s2 = inlined_call_operand.hbm [shape: f32[1,512], index: 2, kind: input, shape index: {}]   ;;  %s4283_s3 = inlined_call_operand.hbm [shape: bf16[512,256], index: 3, kind: input, shape index: {}]   ;;  %s4284_s4 = inlined_call_operand.vmem [shape: f32[1,256], index: 4, kind: input, shape index: {}]   ;;  %s4285_s5 = inlined_call_operand.hbm [shape: bf16[256,128], index: 5, kind: input, shape index: {}]   ;;  %s4286_s6 = inlined_call_operand.vmem [shape: f32[1,128], index: 6, kind: input, shape index: {}]   ;;  %s4287_s7 = inlined_call_operand.hbm [shape: bf16[128,128], index: 7, kind: input, shape index: {}]   ;;  %s4288_s8 = inlined_call_operand.vmem [shape: f32[1,128], index: 8, kind: input, shape index: {}]   ;;  %s4289_s9 = inlined_call_operand.hbm [shape: f32[2,128], index: 9, kind: output, shape index: {}]  }
   0x1   :  { %15 = vsyncpa [#allocation6], 0 }
   0x2   :  { %16 = vsyncpa [#allocation9], 0 }
   0x3   :  { %17 = vsyncpa [#allocation12], 0 }
   0x4   :  { %18 = vsyncpa [#allocation4], 0  ;;  %s36_s11 = sshll.u32 %s4281_s1, 4  ;;  %s37_s11 = int_to_ptr.hbm [resolvable:$true] %s36_s11 }
   0x5   :  { %22 = vsyncadd [#allocation3], 336  ;;  %s4119_s12 = smov [#allocation5]   ;;  %s60_s16 = sshll.u32 %s4283_s3, 4  ;;  %s61_s16 = int_to_ptr.hbm [resolvable:$true] %s60_s16 }
   0x6   :  { %s38_s13 = sshll.u32 %s4119_s12, 4  ;;  %s4120_s17 = smov 256   ;;  %s39_s13 = int_to_ptr.vmem [resolvable:$true] %s38_s13 }
   0x7   :  { %s4121_s18 = smov 16   ;;  %s4122_s19 = smov [#allocation8]  }
   0x8   :  { %44 = dma.hbm_to_vmem [thread:$0]  %s37_s11, 25088, %s39_s13, [#allocation6], %s4120_s17, %s4120_s17, %s4121_s18  }
   0x9   :  { %s62_s20 = sshll.u32 %s4122_s19, 4  ;;  %s4123_s21 = smov 128   ;;  %s63_s20 = int_to_ptr.vmem [resolvable:$true] %s62_s20 }
   0xa   :  { %s4124_s22 = smov 8   ;;  %s23_s24 = sshll.u32 %s4280_s0, 4  ;;  %s24_s24 = int_to_ptr.hbm [resolvable:$true] %s23_s24 }
   0xb   :  { %68 = dma.hbm_to_vmem [thread:$0]  %s61_s16, 8192, %s63_s20, [#allocation9], %s4123_s21, %s4123_s21, %s4124_s22  }
   0xc   :  { %s4125_s25 = smov [#allocation2]   ;;  %s50_s28 = sshll.u32 %s4282_s2, 4  ;;  %s51_s28 = int_to_ptr.hbm [resolvable:$true] %s50_s28 }
   0xd   :  { %s25_s26 = sshll.u32 %s4125_s25, 4  ;;  %s4126_s29 = smov 112   ;;  %s26_s26 = int_to_ptr.vmem [resolvable:$true] %s25_s26 }
   0xe   :  { %s4127_s30 = smov 7   ;;  %s4128_s10 = smov [#allocation7]  }
   0xf   :  { %31 = dma.hbm_to_vmem [thread:$0]  %s24_s24, 112, %s26_s26, [#allocation3], %s4126_s29, %s4126_s29, %s4127_s30  }
  0x10   :  { %s52_s11 = sshll.u32 %s4128_s10, 4  ;;  %s75_s14 = sshll.u32 %s4285_s5, 4  ;;  %s53_s11 = int_to_ptr.vmem [resolvable:$true] %s52_s11  ;;  %s76_s14 = int_to_ptr.hbm [resolvable:$true] %s75_s14 }
  0x11   :  { %55 = dma.hbm_to_vmem [thread:$0]  %s51_s28, 64, %s53_s11, [#allocation6]  }
  0x12   :  { %s4129_s0 = smov [#allocation10]   ;;  %s90_s2 = sshll.u32 %s4287_s7, 4  ;;  %s91_s2 = int_to_ptr.hbm [resolvable:$true] %s90_s2 }
  0x13   :  { %s77_s15 = sshll.u32 %s4129_s0, 4  ;;  %s4130_s18 = smov 64   ;;  %s78_s15 = int_to_ptr.vmem [resolvable:$true] %s77_s15 }
  0x14   :  { %s4131_s19 = smov 4   ;;  %s4132_s20 = smov [#allocation11]  }
  0x15   :  { %83 = dma.hbm_to_vmem [thread:$0]  %s76_s14, 2048, %s78_s15, [#allocation9], %s4130_s18, %s4130_s18, %s4131_s19  }
  0x16   :  { %s92_s21 = sshll.u32 %s4132_s20, 4  ;;  %s93_s21 = int_to_ptr.vmem [resolvable:$true] %s92_s21 }
  0x17   :  { %98 = dma.hbm_to_vmem [thread:$0]  %s91_s2, 1024, %s93_s21, [#allocation12], %s4130_s18, %s4130_s18, %s4131_s19  }
  0x18   :  { %4109 = dma.done.wait [#allocation3], 448  }
  0x19   :  { %4110 = vsyncadd [#allocation3], 4294966848 }
  0x1a   :  { %4111 = dma.done.wait [#allocation6], 25152  }
  0x1b   :  { %4112 = vsyncadd [#allocation6], 4294942144 }
  0x1c   :  { %4113 = dma.done.wait [#allocation9], 10240  }
  0x1d   :  { %4114 = vsyncadd [#allocation9], 4294957056 }
  0x1e   :  { %4115 = dma.done.wait [#allocation12], 1024  }
  0x1f   :  { %4116 = vsyncadd [#allocation12], 4294966272  ;;  %v2601_v0 = vld [vmem:[#allocation5 + $0xe0] sm:$0xf]  ;;  %v3657_v1 = vld [vmem:[#allocation5 + $0xec] sm:$0xf0] }
  0x20   :  { %v2729_v2 = vld [vmem:[#allocation5 + $0x1e0] sm:$0xf]  ;;  %v2602_v3 = vor.u32 %v3657_v1, %v2601_v0  ;;  %v3689_v4 = vld [vmem:[#allocation5 + $0x1ec] sm:$0xf0]  ;;  %vm1340_vm0 = vcmask 130048  }
  0x21   :  { %v2857_v5 = vld [vmem:[#allocation5 + $0x2e0] sm:$0xf]  ;;  %v3721_v6 = vld [vmem:[#allocation5 + $0x2ec] sm:$0xf0]  ;;  %v2730_v7 = vor.u32 %v3689_v4, %v2729_v2 }
  0x22   :  { %v2858_v8 = vor.u32 %v3721_v6, %v2857_v5  ;;  %v2985_v9 = vld [vmem:[#allocation5 + $0x3e0] sm:$0xf]  ;;  %v3753_v10 = vld [vmem:[#allocation5 + $0x3ec] sm:$0xf0]  ;;  %1343 = vmatpush.bf16.msra.mxu0 %v2602_v3 }
  0x23   :  { %v2585_v11 = vld [vmem:[#allocation5 + $0xc0] sm:$0xf]  ;;  %v2986_v12 = vor.u32 %v3753_v10, %v2985_v9  ;;  %v3653_v13 = vld [vmem:[#allocation5 + $0xcc] sm:$0xf0]  ;;  %1356 = vmatpush.bf16.msra.mxu1 %v2730_v7 }
  0x24   :  { %v2713_v14 = vld [vmem:[#allocation5 + $0x1c0] sm:$0xf]  ;;  %v3685_v15 = vld [vmem:[#allocation5 + $0x1cc] sm:$0xf0]  ;;  %1369 = vmatpush.bf16.msra.mxu2 %v2858_v8  ;;  %v2586_v16 = vor.u32 %v3653_v13, %v2585_v11 }
  0x25   :  { %v2714_v17 = vor.u32 %v3685_v15, %v2713_v14  ;;  %v2841_v18 = vld [vmem:[#allocation5 + $0x2c0] sm:$0xf]  ;;  %v3717_v19 = vld [vmem:[#allocation5 + $0x2cc] sm:$0xf0]  ;;  %1382 = vmatpush.bf16.msra.mxu3 %v2986_v12 }
  0x26   :  { %v2969_v20 = vld [vmem:[#allocation5 + $0x3c0] sm:$0xf]  ;;  %v2842_v21 = vor.u32 %v3717_v19, %v2841_v18  ;;  %v3749_v22 = vld [vmem:[#allocation5 + $0x3cc] sm:$0xf0]  ;;  %1344 = vmatpush.bf16.msra.mxu0 %v2586_v16 }
  0x27   :  { %v2569_v23 = vld [vmem:[#allocation5 + $0xa0] sm:$0xf]  ;;  %v3649_v24 = vld [vmem:[#allocation5 + $0xac] sm:$0xf0]  ;;  %v2970_v25 = vor.u32 %v3749_v22, %v2969_v20  ;;  %1357 = vmatpush.bf16.msra.mxu1 %v2714_v17 }
  0x28   :  { %v2697_v26 = vld [vmem:[#allocation5 + $0x1a0] sm:$0xf]  ;;  %v3681_v27 = vld [vmem:[#allocation5 + $0x1ac] sm:$0xf0]  ;;  %v2570_v29 = vor.u32 %v3649_v24, %v2569_v23  ;;  %1370 = vmatpush.bf16.msra.mxu2 %v2842_v21  ;;  %v126_v23 = vld [vmem:[#allocation2] sm:$0x7f] }
  0x29   :  { %v2825_v28 = vld [vmem:[#allocation5 + $0x2a0] sm:$0xf]  ;;  %v3713_v30 = vld [vmem:[#allocation5 + $0x2ac] sm:$0xf0]  ;;  %v2698_v33 = vor.u32 %v3681_v27, %v2697_v26  ;;  %1383 = vmatpush.bf16.msra.mxu3 %v2970_v25  ;;  %337 = vst [vmem:[#allocation1] ss:$9 sm:$0xff] %v126_v23 }
  0x2a   :  { %v2953_v31 = vld [vmem:[#allocation5 + $0x3a0] sm:$0xf]  ;;  %v3745_v32 = vld [vmem:[#allocation5 + $0x3ac] sm:$0xf0]  ;;  %v2826_v34 = vor.u32 %v3713_v30, %v2825_v28  ;;  %1345 = vmatpush.bf16.msra.mxu0 %v2570_v29  ;;  %v129_v30 = vld [vmem:[#allocation2 + $0x15] sm:$0x7f] }
  0x2b   :  { %v2553_v35 = vld [vmem:[#allocation5 + $0x80] sm:$0xf]  ;;  %v3645_v36 = vld [vmem:[#allocation5 + $0x8c] sm:$0xf0]  ;;  %v2954_v38 = vor.u32 %v3745_v32, %v2953_v31  ;;  %1358 = vmatpush.bf16.msra.mxu1 %v2698_v33  ;;  %346 = vst [vmem:[#allocation1 + $0x3] ss:$9 sm:$0xff] %v129_v30 }
  0x2c   :  { %v2681_v37 = vld [vmem:[#allocation5 + $0x180] sm:$0xf]  ;;  %v3677_v39 = vld [vmem:[#allocation5 + $0x18c] sm:$0xf0]  ;;  %v2554_v44 = vor.u32 %v3645_v36, %v2553_v35  ;;  %1371 = vmatpush.bf16.msra.mxu2 %v2826_v34  ;;  %v2683_v23 = vld [vmem:[#allocation5 + $0x190] sm:$0xf0] }
  0x2d   :  { %v2809_v40 = vld [vmem:[#allocation5 + $0x280] sm:$0xf]  ;;  %v3709_v41 = vld [vmem:[#allocation5 + $0x28c] sm:$0xf0]  ;;  %v2682_v45 = vor.u32 %v3677_v39, %v2681_v37  ;;  %1384 = vmatpush.bf16.msra.mxu3 %v2954_v38  ;;  %v3655_v37 = vld [vmem:[#allocation5 + $0xe4] sm:$0xf] }
  0x2e   :  { %v2937_v42 = vld [vmem:[#allocation5 + $0x380] sm:$0xf]  ;;  %v3741_v43 = vld [vmem:[#allocation5 + $0x38c] sm:$0xf0]  ;;  %v2810_v46 = vor.u32 %v3709_v41, %v2809_v40  ;;  %1346 = vmatpush.bf16.msra.mxu0 %v2554_v44  ;;  %v2603_v38 = vld [vmem:[#allocation5 + $0xf0] sm:$0xf0] }
  0x2f   :  { %v2537_v47 = vld [vmem:[#allocation5 + $0x60] sm:$0xf]  ;;  %v3641_v48 = vld [vmem:[#allocation5 + $0x6c] sm:$0xf0]  ;;  %v2938_v50 = vor.u32 %v3741_v43, %v2937_v42  ;;  %1359 = vmatpush.bf16.msra.mxu1 %v2682_v45  ;;  %v3687_v45 = vld [vmem:[#allocation5 + $0x1e4] sm:$0xf] }
  0x30   :  { %v2665_v49 = vld [vmem:[#allocation5 + $0x160] sm:$0xf]  ;;  %v3673_v51 = vld [vmem:[#allocation5 + $0x16c] sm:$0xf0]  ;;  %v2538_v56 = vor.u32 %v3641_v48, %v2537_v47  ;;  %1372 = vmatpush.bf16.msra.mxu2 %v2810_v46  ;;  %v2731_v46 = vld [vmem:[#allocation5 + $0x1f0] sm:$0xf0]  ;;  %v2606_v48 = vor.u32 %v3655_v37, %v2603_v38 }
  0x31   :  { %v2793_v52 = vld [vmem:[#allocation5 + $0x260] sm:$0xf]  ;;  %v3705_v53 = vld [vmem:[#allocation5 + $0x26c] sm:$0xf0]  ;;  %v2666_v57 = vor.u32 %v3673_v51, %v2665_v49  ;;  %1385 = vmatpush.bf16.msra.mxu3 %v2938_v50  ;;  %v3639_v30 = vld [vmem:[#allocation5 + $0x64] sm:$0xf] }
  0x32   :  { %v2921_v54 = vld [vmem:[#allocation5 + $0x360] sm:$0xf]  ;;  %v3737_v55 = vld [vmem:[#allocation5 + $0x36c] sm:$0xf0]  ;;  %v2794_v58 = vor.u32 %v3705_v53, %v2793_v52  ;;  %1347 = vmatpush.bf16.msra.mxu0 %v2538_v56  ;;  %v3651_v53 = vld [vmem:[#allocation5 + $0xc4] sm:$0xf] }
  0x33   :  { %v2521_v59 = vld [vmem:[#allocation5 + $0x40] sm:$0xf]  ;;  %v3637_v60 = vld [vmem:[#allocation5 + $0x4c] sm:$0xf0]  ;;  %v2922_v62 = vor.u32 %v3737_v55, %v2921_v54  ;;  %1360 = vmatpush.bf16.msra.mxu1 %v2666_v57  ;;  %v2587_v54 = vld [vmem:[#allocation5 + $0xd0] sm:$0xf0] }
  0x34   :  { %v2649_v61 = vld [vmem:[#allocation5 + $0x140] sm:$0xf]  ;;  %v3669_v63 = vld [vmem:[#allocation5 + $0x14c] sm:$0xf0]  ;;  %v2522_v4 = vor.u32 %v3637_v60, %v2521_v59  ;;  %1373 = vmatpush.bf16.msra.mxu2 %v2794_v58  ;;  %v3683_v56 = vld [vmem:[#allocation5 + $0x1c4] sm:$0xf]  ;;  %v2734_v58 = vor.u32 %v3687_v45, %v2731_v46 }
  0x35   :  { %v2777_v0 = vld [vmem:[#allocation5 + $0x240] sm:$0xf]  ;;  %v3701_v1 = vld [vmem:[#allocation5 + $0x24c] sm:$0xf0]  ;;  %v2650_v6 = vor.u32 %v3669_v63, %v2649_v61  ;;  %1386 = vmatpush.bf16.msra.mxu3 %v2922_v62  ;;  %v2715_v57 = vld [vmem:[#allocation5 + $0x1d0] sm:$0xf0] }
  0x36   :  { %v2905_v2 = vld [vmem:[#allocation5 + $0x340] sm:$0xf]  ;;  %v3733_v3 = vld [vmem:[#allocation5 + $0x34c] sm:$0xf0]  ;;  %v2778_v7 = vor.u32 %v3701_v1, %v2777_v0  ;;  %1348 = vmatpush.bf16.msra.mxu0 %v2522_v4  ;;  %v2590_v1 = vor.u32 %v3651_v53, %v2587_v54 }
  0x37   :  { %v2505_v5 = vld [vmem:[#allocation5 + $0x20] sm:$0xf]  ;;  %v3633_v8 = vld [vmem:[#allocation5 + $0x2c] sm:$0xf0]  ;;  %v2906_v11 = vor.u32 %v3733_v3, %v2905_v2  ;;  %1361 = vmatpush.bf16.msra.mxu1 %v2650_v6  ;;  %v2571_v6 = vld [vmem:[#allocation5 + $0xb0] sm:$0xf0] }
  0x38   :  { %v2633_v9 = vld [vmem:[#allocation5 + $0x120] sm:$0xf]  ;;  %v3665_v10 = vld [vmem:[#allocation5 + $0x12c] sm:$0xf0]  ;;  %v2506_v18 = vor.u32 %v3633_v8, %v2505_v5  ;;  %1374 = vmatpush.bf16.msra.mxu2 %v2778_v7  ;;  %v3647_v5 = vld [vmem:[#allocation5 + $0xa4] sm:$0xf]  ;;  %v2718_v8 = vor.u32 %v3683_v56, %v2715_v57 }
  0x39   :  { %v2761_v12 = vld [vmem:[#allocation5 + $0x220] sm:$0xf]  ;;  %v3697_v13 = vld [vmem:[#allocation5 + $0x22c] sm:$0xf0]  ;;  %v2634_v25 = vor.u32 %v3665_v10, %v2633_v9  ;;  %1387 = vmatpush.bf16.msra.mxu3 %v2906_v11  ;;  %v3679_v10 = vld [vmem:[#allocation5 + $0x1a4] sm:$0xf] }
  0x3a   :  { %v2889_v14 = vld [vmem:[#allocation5 + $0x320] sm:$0xf]  ;;  %v3729_v15 = vld [vmem:[#allocation5 + $0x32c] sm:$0xf0]  ;;  %v2762_v26 = vor.u32 %v3697_v13, %v2761_v12  ;;  %1349 = vmatpush.bf16.msra.mxu0 %v2506_v18  ;;  %v2699_v11 = vld [vmem:[#allocation5 + $0x1b0] sm:$0xf0]  ;;  %v2574_v13 = vor.u32 %v3647_v5, %v2571_v6 }
  0x3b   :  { %v2489_v16 = vld [vmem:[#allocation5] sm:$0xf]  ;;  %v3629_v17 = vld [vmem:[#allocation5 + $0xc] sm:$0xf0]  ;;  %v2890_v31 = vor.u32 %v3729_v15, %v2889_v14  ;;  %1362 = vmatpush.bf16.msra.mxu1 %v2634_v25  ;;  %v3643_v18 = vld [vmem:[#allocation5 + $0x84] sm:$0xf] }
  0x3c   :  { %v2617_v19 = vld [vmem:[#allocation5 + $0x100] sm:$0xf]  ;;  %v3661_v20 = vld [vmem:[#allocation5 + $0x10c] sm:$0xf0]  ;;  %v2490_v36 = vor.u32 %v3629_v17, %v2489_v16  ;;  %1375 = vmatpush.bf16.msra.mxu2 %v2762_v26  ;;  %v2507_v56 = vld [vmem:[#allocation5 + $0x30] sm:$0xf0] }
  0x3d   :  { %v2745_v21 = vld [vmem:[#allocation5 + $0x200] sm:$0xf]  ;;  %v3693_v22 = vld [vmem:[#allocation5 + $0x20c] sm:$0xf0]  ;;  %v2618_v39 = vor.u32 %v3661_v20, %v2617_v19  ;;  %1388 = vmatpush.bf16.msra.mxu3 %v2890_v31  ;;  %v2555_v19 = vld [vmem:[#allocation5 + $0x90] sm:$0xf0]  ;;  %v2702_v20 = vor.u32 %v3679_v10, %v2699_v11 }
  0x3e   :  { %v127_v24 = vld [vmem:[#allocation2 + $0x7] sm:$0x7f]  ;;  %v2873_v27 = vld [vmem:[#allocation5 + $0x300] sm:$0xf]  ;;  %v128_v29 = vld [vmem:[#allocation2 + $0xe] sm:$0x7f]  ;;  %v2746_v40 = vor.u32 %v3693_v22, %v2745_v21  ;;  %1350 = vmatpush.bf16.msra.mxu0 %v2490_v36  ;;  %v2558_v25 = vor.u32 %v3643_v18, %v2555_v19 }
  0x3f   :  { %v3725_v28 = vld [vmem:[#allocation5 + $0x30c] sm:$0xf0]  ;;  %v3113_v32 = vld [vmem:[#allocation5 + $0x4e0] sm:$0xf]  ;;  %340 = vst [vmem:[#allocation1 + $0x1] ss:$9 sm:$0xff] %v127_v24  ;;  %1363 = vmatpush.bf16.msra.mxu1 %v2618_v39 }
  0x40   :  { %v3785_v33 = vld [vmem:[#allocation5 + $0x4ec] sm:$0xf0]  ;;  %v3241_v34 = vld [vmem:[#allocation5 + $0x5e0] sm:$0xf]  ;;  %343 = vst [vmem:[#allocation1 + $0x2] ss:$9 sm:$0xff] %v128_v29  ;;  %v2874_v42 = vor.u32 %v3725_v28, %v2873_v27  ;;  %1376 = vmatpush.bf16.msra.mxu2 %v2746_v40 }
  0x41   :  { %v3817_v35 = vld [vmem:[#allocation5 + $0x5ec] sm:$0xf0]  ;;  %v3257_v41 = vld [vmem:[#allocation5 + $0x600] sm:$0xf]  ;;  %v3114_v43 = vor.u32 %v3785_v33, %v3113_v32  ;;  %v3675_v22 = vld [vmem:[#allocation5 + $0x184] sm:$0xf] }
  0x42   :  { %v3821_v44 = vld [vmem:[#allocation5 + $0x60c] sm:$0xf0]  ;;  %v3242_v47 = vor.u32 %v3817_v35, %v3241_v34  ;;  %v3097_v49 = vld [vmem:[#allocation5 + $0x4c0] sm:$0xf]  ;;  %1389 = vmatpush.bf16.msra.mxu3 %v2874_v42  ;;  %v2539_v31 = vld [vmem:[#allocation5 + $0x70] sm:$0xf0]  ;;  %v2686_v32 = vor.u32 %v3675_v22, %v2683_v23 }
  0x43   :  { %v3781_v50 = vld [vmem:[#allocation5 + $0x4cc] sm:$0xf0]  ;;  %v3225_v51 = vld [vmem:[#allocation5 + $0x5c0] sm:$0xf]  ;;  %v3258_v55 = vor.u32 %v3821_v44, %v3257_v41  ;;  %1395 = vmatpush.bf16.msrb.mxu0 %v3114_v43  ;;  %v3671_v34 = vld [vmem:[#allocation5 + $0x164] sm:$0xf]  ;;  %v2542_v37 = vor.u32 %v3639_v30, %v2539_v31 }
  0x44   :  { %v3813_v52 = vld [vmem:[#allocation5 + $0x5cc] sm:$0xf0]  ;;  %v3098_v59 = vor.u32 %v3781_v50, %v3097_v49  ;;  %v3081_v60 = vld [vmem:[#allocation5 + $0x4a0] sm:$0xf]  ;;  %1408 = vmatpush.bf16.msrb.mxu1 %v3242_v47  ;;  %v2667_v35 = vld [vmem:[#allocation5 + $0x170] sm:$0xf0] }
  0x45   :  { %v3777_v61 = vld [vmem:[#allocation5 + $0x4ac] sm:$0xf0]  ;;  %v3209_v62 = vld [vmem:[#allocation5 + $0x5a0] sm:$0xf]  ;;  %v3226_v0 = vor.u32 %v3813_v52, %v3225_v51  ;;  %1428 = vmatpush.bf16.msrb.mxu2 %v3258_v55  ;;  %v3635_v42 = vld [vmem:[#allocation5 + $0x44] sm:$0xf]  ;;  %v2670_v45 = vor.u32 %v3671_v34, %v2667_v35 }
  0x46   :  { %1434 = vmatpush.bf16.msrb.mxu3 %v2606_v48  ;;  %v3809_v4 = vld [vmem:[#allocation5 + $0x5ac] sm:$0xf0]  ;;  %v3082_v9 = vor.u32 %v3777_v61, %v3081_v60  ;;  %v3065_v14 = vld [vmem:[#allocation5 + $0x480] sm:$0xf]  ;;  %v2523_v43 = vld [vmem:[#allocation5 + $0x50] sm:$0xf0] }
  0x47   :  { %v4204_v63 = vld [vmem:[#allocation1 + $0x12] sm:$0xff]  ;;  %v4206_v2 = vld [vmem:[#allocation1] sm:$0xff]  ;;  %v4213_v7 = vld [vmem:[#allocation1 + $0x9] sm:$0xff]  ;;  %1396 = vmatpush.bf16.msrb.mxu0 %v3098_v59  ;;  %v3210_v12 = vor.u32 %v3809_v4, %v3209_v62  ;;  %v2526_v50 = vor.u32 %v3635_v42, %v2523_v43 }
  0x48   :  { %v4208_v3 = vld [vmem:[#allocation1 + $0x1b] sm:$0xff]  ;;  %1377 = vmatmul.bf16.vlgmr.msra.gmra.mxu2 %v4204_v63  ;;  %1351 = vmatmul.bf16.vlgmr.msra.gmra.mxu0 %v4206_v2  ;;  %v3773_v15 = vld [vmem:[#allocation5 + $0x48c] sm:$0xf0]  ;;  %v3193_v16 = vld [vmem:[#allocation5 + $0x580] sm:$0xf] }
  0x49   :  { %1390 = vmatmul.bf16.vlgmr.msra.gmra.mxu3 %v4208_v3  ;;  %1447 = vmatpush.bf16.msra.mxu2 %v2734_v58  ;;  %v3805_v17 = vld [vmem:[#allocation5 + $0x58c] sm:$0xf0]  ;;  %v3066_v21 = vor.u32 %v3773_v15, %v3065_v14  ;;  %v3049_v26 = vld [vmem:[#allocation5 + $0x460] sm:$0xf]  ;;  %v3667_v47 = vld [vmem:[#allocation5 + $0x144] sm:$0xf] }
  0x4a   :  { %1409 = vmatpush.bf16.msrb.mxu1 %v3226_v0  ;;  %1435 = vmatpush.bf16.msrb.mxu3 %v2590_v1  ;;  %v3194_v24 = vor.u32 %v3805_v17, %v3193_v16  ;;  %v3769_v27 = vld [vmem:[#allocation5 + $0x46c] sm:$0xf0]  ;;  %v3177_v28 = vld [vmem:[#allocation5 + $0x560] sm:$0xf]  ;;  %v2651_v48 = vld [vmem:[#allocation5 + $0x150] sm:$0xf0] }
  0x4b   :  { %1364 = vmatmul.bf16.vlgmr.msra.gmra.mxu1 %v4213_v7  ;;  %1397 = vmatpush.bf16.msrb.mxu0 %v3082_v9  ;;  %v3801_v29 = vld [vmem:[#allocation5 + $0x56c] sm:$0xf0]  ;;  %v3050_v33 = vor.u32 %v3769_v27, %v3049_v26  ;;  %v3033_v38 = vld [vmem:[#allocation5 + $0x440] sm:$0xf]  ;;  %v3631_v55 = vld [vmem:[#allocation5 + $0x24] sm:$0xf]  ;;  %v2654_v57 = vor.u32 %v3667_v47, %v2651_v48 }
  0x4c   :  { %v3178_v36 = vor.u32 %v3801_v29, %v3177_v28  ;;  %v3765_v39 = vld [vmem:[#allocation5 + $0x44c] sm:$0xf0]  ;;  %v3161_v40 = vld [vmem:[#allocation5 + $0x540] sm:$0xf]  ;;  %v3663_v59 = vld [vmem:[#allocation5 + $0x124] sm:$0xf]  ;;  %v2510_v0 = vor.u32 %v3631_v55, %v2507_v56 }
  0x4d   :  { %1448 = vmatpush.bf16.msra.mxu2 %v2718_v8  ;;  %v3797_v41 = vld [vmem:[#allocation5 + $0x54c] sm:$0xf0]  ;;  %v3034_v46 = vor.u32 %v3765_v39, %v3033_v38  ;;  %v3017_v51 = vld [vmem:[#allocation5 + $0x420] sm:$0xf]  ;;  %v2635_v60 = vld [vmem:[#allocation5 + $0x130] sm:$0xf0] }
  0x4e   :  { %1410 = vmatpush.bf16.msrb.mxu1 %v3210_v12  ;;  %1436 = vmatpush.bf16.msrb.mxu3 %v2574_v13  ;;  %v4216_v44 = vld [vmem:[#allocation1 + $0x36] sm:$0xff]  ;;  %v3162_v49 = vor.u32 %v3797_v41, %v3161_v40  ;;  %v3145_v53 = vld [vmem:[#allocation5 + $0x520] sm:$0xf]  ;;  %v3627_v6 = vld [vmem:[#allocation5 + $0x4] sm:$0xf]  ;;  %v2638_v13 = vor.u32 %v3663_v59, %v2635_v60 }
  0x4f   :  { %1398 = vmatpush.bf16.msrb.mxu0 %v3066_v21  ;;  %v3761_v52 = vld [vmem:[#allocation5 + $0x42c] sm:$0xf0]  ;;  %v3001_v61 = vld [vmem:[#allocation5 + $0x400] sm:$0xf]  ;;  %v2491_v8 = vld [vmem:[#allocation5 + $0x10] sm:$0xf0] }
  0x50   :  { %v3793_v54 = vld [vmem:[#allocation5 + $0x52c] sm:$0xf0]  ;;  %v3018_v58 = vor.u32 %v3761_v52, %v3017_v51  ;;  %v3129_v4 = vld [vmem:[#allocation5 + $0x500] sm:$0xf]  ;;  %v3719_v9 = vld [vmem:[#allocation5 + $0x2e4] sm:$0xf]  ;;  %v2494_v18 = vor.u32 %v3627_v6, %v2491_v8 }
  0x51   :  { %1449 = vmatpush.bf16.msra.mxu2 %v2702_v20  ;;  %v3146_v62 = vor.u32 %v3793_v54, %v3145_v53  ;;  %v3757_v1 = vld [vmem:[#allocation5 + $0x40c] sm:$0xf0]  ;;  %v2859_v10 = vld [vmem:[#allocation5 + $0x2f0] sm:$0xf0]  ;;  %v3751_v11 = vld [vmem:[#allocation5 + $0x3e4] sm:$0xf] }
  0x52   :  { %1411 = vmatpush.bf16.msrb.mxu1 %v3194_v24  ;;  %1437 = vmatpush.bf16.msrb.mxu3 %v2558_v25  ;;  %v3789_v5 = vld [vmem:[#allocation5 + $0x50c] sm:$0xf0]  ;;  %v2987_v12 = vld [vmem:[#allocation5 + $0x3f0] sm:$0xf0]  ;;  %v3002_v14 = vor.u32 %v3757_v1, %v3001_v61  ;;  %v3783_v15 = vld [vmem:[#allocation5 + $0x4e4] sm:$0xf]  ;;  %v2862_v21 = vor.u32 %v3719_v9, %v2859_v10 }
  0x53   :  { %1399 = vmatpush.bf16.msrb.mxu0 %v3050_v33  ;;  %v3115_v16 = vld [vmem:[#allocation5 + $0x4f0] sm:$0xf0]  ;;  %v3130_v17 = vor.u32 %v3789_v5, %v3129_v4  ;;  %v3659_v19 = vld [vmem:[#allocation5 + $0x104] sm:$0xf]  ;;  %v2990_v22 = vor.u32 %v3751_v11, %v2987_v12  ;;  %v4222_v35 = vld [vmem:[#allocation1 + $0x2d] sm:$0xff] }
  0x54   :  { %v2619_v20 = vld [vmem:[#allocation5 + $0x110] sm:$0xf0]  ;;  %v3815_v23 = vld [vmem:[#allocation5 + $0x5e4] sm:$0xf]  ;;  %v3118_v26 = vor.u32 %v3783_v15, %v3115_v16 }
  0x55   :  { %1450 = vmatpush.bf16.msra.mxu2 %v2686_v32  ;;  %v3243_v24 = vld [vmem:[#allocation5 + $0x5f0] sm:$0xf0]  ;;  %v3715_v25 = vld [vmem:[#allocation5 + $0x2c4] sm:$0xf]  ;;  %v2622_v31 = vor.u32 %v3659_v19, %v2619_v20 }
  0x56   :  { %1412 = vmatpush.bf16.msrb.mxu1 %v3178_v36  ;;  %1438 = vmatpush.bf16.msrb.mxu3 %v2542_v37  ;;  %v2843_v27 = vld [vmem:[#allocation5 + $0x2d0] sm:$0xf0]  ;;  %v3747_v28 = vld [vmem:[#allocation5 + $0x3c4] sm:$0xf]  ;;  %v3246_v34 = vor.u32 %v3815_v23, %v3243_v24 }
  0x57   :  { %1400 = vmatpush.bf16.msrb.mxu0 %v3034_v46  ;;  %v2971_v29 = vld [vmem:[#allocation5 + $0x3d0] sm:$0xf0]  ;;  %v4220_v30 = vld [vmem:[#allocation1 + $0x24] sm:$0xff]  ;;  %v2846_v36 = vor.u32 %v3715_v25, %v2843_v27 }
  0x58   :  { %3271 = vmatmul.msk.bf16.vlgmr.msrb.gmra.mxu2 %vm1340_vm0, %v4216_v44  ;;  %v3779_v32 = vld [vmem:[#allocation5 + $0x4c4] sm:$0xf]  ;;  %v3099_v33 = vld [vmem:[#allocation5 + $0x4d0] sm:$0xf0]  ;;  %v2974_v37 = vor.u32 %v3747_v28, %v2971_v29 }
  0x59   :  { %1451 = vmatpush.bf16.msra.mxu2 %v2670_v45  ;;  %v3811_v38 = vld [vmem:[#allocation5 + $0x5c4] sm:$0xf]  ;;  %v3227_v39 = vld [vmem:[#allocation5 + $0x5d0] sm:$0xf0]  ;;  %v3102_v41 = vor.u32 %v3779_v32, %v3099_v33 }
  0x5a   :  { %1413 = vmatpush.bf16.msrb.mxu1 %v3162_v49  ;;  %1439 = vmatpush.bf16.msrb.mxu3 %v2526_v50  ;;  %v3711_v40 = vld [vmem:[#allocation5 + $0x2a4] sm:$0xf]  ;;  %v2827_v42 = vld [vmem:[#allocation5 + $0x2b0] sm:$0xf0]  ;;  %v3230_v48 = vor.u32 %v3811_v38, %v3227_v39 }
  0x5b   :  { %1401 = vmatpush.bf16.msrb.mxu0 %v3018_v58  ;;  %v3743_v43 = vld [vmem:[#allocation5 + $0x3a4] sm:$0xf]  ;;  %v2955_v45 = vld [vmem:[#allocation5 + $0x3b0] sm:$0xf0]  ;;  %v2830_v49 = vor.u32 %v3711_v40, %v2827_v42 }
  0x5c   :  { %v3775_v46 = vld [vmem:[#allocation5 + $0x4a4] sm:$0xf]  ;;  %v3083_v47 = vld [vmem:[#allocation5 + $0x4b0] sm:$0xf0]  ;;  %v2958_v50 = vor.u32 %v3743_v43, %v2955_v45 }
  0x5d   :  { %1452 = vmatpush.bf16.msra.mxu2 %v2654_v57  ;;  %v3807_v51 = vld [vmem:[#allocation5 + $0x5a4] sm:$0xf]  ;;  %v3211_v52 = vld [vmem:[#allocation5 + $0x5b0] sm:$0xf0]  ;;  %v3086_v54 = vor.u32 %v3775_v46, %v3083_v47 }
  0x5e   :  { %1414 = vmatpush.bf16.msrb.mxu1 %v3146_v62  ;;  %1440 = vmatpush.bf16.msrb.mxu3 %v2510_v0  ;;  %v3707_v53 = vld [vmem:[#allocation5 + $0x284] sm:$0xf]  ;;  %v2811_v55 = vld [vmem:[#allocation5 + $0x290] sm:$0xf0]  ;;  %v3214_v60 = vor.u32 %v3807_v51, %v3211_v52  ;;  %v2609_v51 = vld [vmem:[#allocation5 + $0xe8] sm:$0xf] }
  0x5f   :  { %1402 = vmatpush.bf16.msrb.mxu0 %v3002_v14  ;;  %v3739_v56 = vld [vmem:[#allocation5 + $0x384] sm:$0xf]  ;;  %v2939_v57 = vld [vmem:[#allocation5 + $0x390] sm:$0xf0]  ;;  %v2814_v61 = vor.u32 %v3707_v53, %v2811_v55  ;;  %v3658_v52 = vld [vmem:[#allocation5 + $0xf4] sm:$0xf0] }
  0x60   :  { %v3771_v58 = vld [vmem:[#allocation5 + $0x484] sm:$0xf]  ;;  %v3067_v59 = vld [vmem:[#allocation5 + $0x490] sm:$0xf0]  ;;  %v2942_v62 = vor.u32 %v3739_v56, %v2939_v57  ;;  %v2737_v53 = vld [vmem:[#allocation5 + $0x1e8] sm:$0xf] }
  0x61   :  { %1453 = vmatpush.bf16.msra.mxu2 %v2638_v13  ;;  %v3803_v0 = vld [vmem:[#allocation5 + $0x584] sm:$0xf]  ;;  %v3195_v1 = vld [vmem:[#allocation5 + $0x590] sm:$0xf0]  ;;  %v3070_v5 = vor.u32 %v3771_v58, %v3067_v59  ;;  %v3690_v55 = vld [vmem:[#allocation5 + $0x1f4] sm:$0xf0] }
  0x62   :  { %1415 = vmatpush.bf16.msrb.mxu1 %v3130_v17  ;;  %1441 = vmatpush.bf16.msrb.mxu3 %v2494_v18  ;;  %v3703_v4 = vld [vmem:[#allocation5 + $0x264] sm:$0xf]  ;;  %v2795_v6 = vld [vmem:[#allocation5 + $0x270] sm:$0xf0]  ;;  %v3198_v12 = vor.u32 %v3803_v0, %v3195_v1  ;;  %v2610_v1 = vor.u32 %v3658_v52, %v2609_v51  ;;  %v3642_v51 = vld [vmem:[#allocation5 + $0x74] sm:$0xf0] }
  0x63   :  { %1460 = vmatpush.bf16.msra.mxu0 %v2862_v21  ;;  %v3735_v8 = vld [vmem:[#allocation5 + $0x364] sm:$0xf]  ;;  %v2923_v9 = vld [vmem:[#allocation5 + $0x370] sm:$0xf0]  ;;  %v2798_v13 = vor.u32 %v3703_v4, %v2795_v6  ;;  %v3722_v4 = vld [vmem:[#allocation5 + $0x2f4] sm:$0xf0] }
  0x64   :  { %1403 = vmatmul.bf16.vlgmr.msrb.gmra.mxu0 %v4220_v30  ;;  %v3767_v10 = vld [vmem:[#allocation5 + $0x464] sm:$0xf]  ;;  %v3051_v11 = vld [vmem:[#allocation5 + $0x470] sm:$0xf0]  ;;  %v2926_v14 = vor.u32 %v3735_v8, %v2923_v9  ;;  %v3754_v6 = vld [vmem:[#allocation5 + $0x3f4] sm:$0xf0]  ;;  %v2738_v8 = vor.u32 %v3690_v55, %v2737_v53 }
  0x65   :  { %1454 = vmatpush.bf16.msra.mxu2 %v2622_v31  ;;  %1416 = vmatmul.bf16.vlgmr.msrb.gmra.mxu1 %v4222_v35  ;;  %v3799_v15 = vld [vmem:[#allocation5 + $0x564] sm:$0xf]  ;;  %v3179_v16 = vld [vmem:[#allocation5 + $0x570] sm:$0xf0]  ;;  %v3054_v18 = vor.u32 %v3767_v10, %v3051_v11  ;;  %v2593_v10 = vld [vmem:[#allocation5 + $0xc8] sm:$0xf] }
  0x66   :  { %1473 = vmatpush.bf16.msra.mxu1 %v2990_v22  ;;  %1486 = vmatpush.bf16.msra.mxu3 %v3118_v26  ;;  %v3699_v17 = vld [vmem:[#allocation5 + $0x244] sm:$0xf]  ;;  %v2779_v19 = vld [vmem:[#allocation5 + $0x250] sm:$0xf0]  ;;  %v3182_v24 = vor.u32 %v3799_v15, %v3179_v16  ;;  %v3654_v11 = vld [vmem:[#allocation5 + $0xd4] sm:$0xf0] }
  0x67   :  { %1442 = vmatmul.bf16.vlgmr.msrb.gmra.mxu3 %v4206_v2  ;;  %1461 = vmatpush.bf16.msra.mxu0 %v2846_v36  ;;  %v3731_v20 = vld [vmem:[#allocation5 + $0x344] sm:$0xf]  ;;  %v2907_v21 = vld [vmem:[#allocation5 + $0x350] sm:$0xf0]  ;;  %v2782_v25 = vor.u32 %v3699_v17, %v2779_v19  ;;  %v2849_v17 = vld [vmem:[#allocation5 + $0x2c8] sm:$0xf] }
  0x68   :  { %1455 = vmatmul.bf16.vlgmr.msra.gmra.mxu2 %v4213_v7  ;;  %v3763_v22 = vld [vmem:[#allocation5 + $0x444] sm:$0xf]  ;;  %v3035_v23 = vld [vmem:[#allocation5 + $0x450] sm:$0xf0]  ;;  %v2910_v26 = vor.u32 %v3731_v20, %v2907_v21  ;;  %v3718_v19 = vld [vmem:[#allocation5 + $0x2d4] sm:$0xf0] }
  0x69   :  { %1499 = vmatpush.bf16.msrb.mxu2 %v3246_v34  ;;  %v3795_v27 = vld [vmem:[#allocation5 + $0x544] sm:$0xf]  ;;  %v3163_v28 = vld [vmem:[#allocation5 + $0x550] sm:$0xf0]  ;;  %v3038_v31 = vor.u32 %v3763_v22, %v3035_v23  ;;  %v2977_v20 = vld [vmem:[#allocation5 + $0x3c8] sm:$0xf] }
  0x6a   :  { %1474 = vmatpush.bf16.msra.mxu1 %v2974_v37  ;;  %1487 = vmatpush.bf16.msra.mxu3 %v3102_v41  ;;  %v3695_v29 = vld [vmem:[#allocation5 + $0x224] sm:$0xf]  ;;  %v2763_v32 = vld [vmem:[#allocation5 + $0x230] sm:$0xf0]  ;;  %v3166_v38 = vor.u32 %v3795_v27, %v3163_v28  ;;  %v3750_v21 = vld [vmem:[#allocation5 + $0x3d4] sm:$0xf0]  ;;  %v2850_v27 = vor.u32 %v3718_v19, %v2849_v17 }
  0x6b   :  { %1462 = vmatpush.bf16.msra.mxu0 %v2830_v49  ;;  %v3727_v33 = vld [vmem:[#allocation5 + $0x324] sm:$0xf]  ;;  %v2891_v34 = vld [vmem:[#allocation5 + $0x330] sm:$0xf0]  ;;  %v2766_v41 = vor.u32 %v3695_v29, %v2763_v32  ;;  %v2577_v23 = vld [vmem:[#allocation5 + $0xa8] sm:$0xf]  ;;  %v2978_v28 = vor.u32 %v3750_v21, %v2977_v20 }
  0x6c   :  { %v3759_v36 = vld [vmem:[#allocation5 + $0x424] sm:$0xf]  ;;  %v3019_v37 = vld [vmem:[#allocation5 + $0x430] sm:$0xf0]  ;;  %v2894_v42 = vor.u32 %v3727_v33, %v2891_v34  ;;  %v2833_v29 = vld [vmem:[#allocation5 + $0x2a8] sm:$0xf] }
  0x6d   :  { %1500 = vmatpush.bf16.msrb.mxu2 %v3230_v48  ;;  %v3791_v39 = vld [vmem:[#allocation5 + $0x524] sm:$0xf]  ;;  %v3147_v40 = vld [vmem:[#allocation5 + $0x530] sm:$0xf0]  ;;  %v3022_v47 = vor.u32 %v3759_v36, %v3019_v37  ;;  %v3714_v32 = vld [vmem:[#allocation5 + $0x2b4] sm:$0xf0] }
  0x6e   :  { %1475 = vmatpush.bf16.msra.mxu1 %v2958_v50  ;;  %1488 = vmatpush.bf16.msra.mxu3 %v3086_v54  ;;  %v3691_v43 = vld [vmem:[#allocation5 + $0x204] sm:$0xf]  ;;  %v2747_v45 = vld [vmem:[#allocation5 + $0x210] sm:$0xf0]  ;;  %v3150_v54 = vor.u32 %v3791_v39, %v3147_v40  ;;  %v2961_v33 = vld [vmem:[#allocation5 + $0x3a8] sm:$0xf] }
  0x6f   :  { %1463 = vmatpush.bf16.msra.mxu0 %v2814_v61  ;;  %v3723_v46 = vld [vmem:[#allocation5 + $0x304] sm:$0xf]  ;;  %v2875_v48 = vld [vmem:[#allocation5 + $0x310] sm:$0xf0]  ;;  %v2750_v58 = vor.u32 %v3691_v43, %v2747_v45  ;;  %v3746_v34 = vld [vmem:[#allocation5 + $0x3b4] sm:$0xf0] }
  0x70   :  { %v3755_v49 = vld [vmem:[#allocation5 + $0x404] sm:$0xf]  ;;  %v3003_v50 = vld [vmem:[#allocation5 + $0x410] sm:$0xf0]  ;;  %v2878_v59 = vor.u32 %v3723_v46, %v2875_v48  ;;  %v2561_v37 = vld [vmem:[#allocation5 + $0x88] sm:$0xf] }
  0x71   :  { %1501 = vmatpush.bf16.msrb.mxu2 %v3214_v60  ;;  %v3819_v56 = vld [vmem:[#allocation5 + $0x604] sm:$0xf]  ;;  %v3259_v57 = vld [vmem:[#allocation5 + $0x610] sm:$0xf0]  ;;  %v3006_v0 = vor.u32 %v3755_v49, %v3003_v50  ;;  %v2689_v39 = vld [vmem:[#allocation5 + $0x188] sm:$0xf] }
  0x72   :  { %1476 = vmatpush.bf16.msra.mxu1 %v2942_v62  ;;  %1489 = vmatpush.bf16.msra.mxu3 %v3070_v5  ;;  %v3787_v60 = vld [vmem:[#allocation5 + $0x504] sm:$0xf]  ;;  %v3131_v61 = vld [vmem:[#allocation5 + $0x510] sm:$0xf0]  ;;  %v2865_v62 = vld [vmem:[#allocation5 + $0x2e8] sm:$0xf]  ;;  %v3262_v9 = vor.u32 %v3819_v56, %v3259_v57 }
  0x73   :  { %1464 = vmatpush.bf16.msra.mxu0 %v2798_v13  ;;  %v2993_v5 = vld [vmem:[#allocation5 + $0x3e8] sm:$0xf]  ;;  %v2866_v15 = vor.u32 %v3722_v4, %v2865_v62  ;;  %v3678_v40 = vld [vmem:[#allocation5 + $0x194] sm:$0xf0] }
  0x74   :  { %v2721_v13 = vld [vmem:[#allocation5 + $0x1c8] sm:$0xf]  ;;  %v2994_v16 = vor.u32 %v3754_v6, %v2993_v5  ;;  %v3710_v46 = vld [vmem:[#allocation5 + $0x294] sm:$0xf0]  ;;  %v2690_v49 = vor.u32 %v3678_v40, %v2689_v39 }
  0x75   :  { %1502 = vmatpush.bf16.msrb.mxu2 %v3198_v12  ;;  %v3134_v12 = vor.u32 %v3787_v60, %v3131_v61  ;;  %v2817_v43 = vld [vmem:[#allocation5 + $0x288] sm:$0xf]  ;;  %v3742_v48 = vld [vmem:[#allocation5 + $0x394] sm:$0xf0] }
  0x76   :  { %1477 = vmatpush.bf16.msra.mxu1 %v2926_v14  ;;  %1490 = vmatpush.bf16.msra.mxu3 %v3054_v18  ;;  %v3686_v14 = vld [vmem:[#allocation5 + $0x1d4] sm:$0xf0]  ;;  %v2594_v18 = vor.u32 %v3654_v11, %v2593_v10  ;;  %v2545_v50 = vld [vmem:[#allocation5 + $0x68] sm:$0xf] }
  0x77   :  { %1465 = vmatpush.bf16.msra.mxu0 %v2782_v25  ;;  %v2722_v22 = vor.u32 %v3686_v14, %v2721_v13  ;;  %v2705_v25 = vld [vmem:[#allocation5 + $0x1a8] sm:$0xf]  ;;  %v3674_v53 = vld [vmem:[#allocation5 + $0x174] sm:$0xf0]  ;;  %v2546_v57 = vor.u32 %v3642_v51, %v2545_v50 }
  0x78   :  { %v2673_v52 = vld [vmem:[#allocation5 + $0x168] sm:$0xf]  ;;  %v3738_v60 = vld [vmem:[#allocation5 + $0x374] sm:$0xf0] }
  0x79   :  { %1503 = vmatpush.bf16.msrb.mxu2 %v3182_v24  ;;  %v3650_v24 = vld [vmem:[#allocation5 + $0xb4] sm:$0xf0]  ;;  %v2801_v56 = vld [vmem:[#allocation5 + $0x268] sm:$0xf]  ;;  %v2674_v61 = vor.u32 %v3674_v53, %v2673_v52 }
  0x7a   :  { %1478 = vmatpush.bf16.msra.mxu1 %v2910_v26  ;;  %1491 = vmatpush.bf16.msra.mxu3 %v3038_v31  ;;  %v3682_v26 = vld [vmem:[#allocation5 + $0x1b4] sm:$0xf0]  ;;  %v2578_v31 = vor.u32 %v3650_v24, %v2577_v23  ;;  %v2529_v62 = vld [vmem:[#allocation5 + $0x48] sm:$0xf] }
  0x7b   :  { %1466 = vmatpush.bf16.msra.mxu0 %v2766_v41  ;;  %v2706_v36 = vor.u32 %v3682_v26, %v2705_v25  ;;  %v2834_v41 = vor.u32 %v3714_v32, %v2833_v29  ;;  %v3670_v4 = vld [vmem:[#allocation5 + $0x154] sm:$0xf0]  ;;  %v2913_v11 = vld [vmem:[#allocation5 + $0x348] sm:$0xf] }
  0x7c   :  { %v3702_v10 = vld [vmem:[#allocation5 + $0x254] sm:$0xf0]  ;;  %v2513_v14 = vld [vmem:[#allocation5 + $0x28] sm:$0xf] }
  0x7d   :  { %1504 = vmatpush.bf16.msrb.mxu2 %v3166_v38  ;;  %v3646_v38 = vld [vmem:[#allocation5 + $0x94] sm:$0xf0]  ;;  %v2769_v20 = vld [vmem:[#allocation5 + $0x228] sm:$0xf] }
  0x7e   :  { %1479 = vmatpush.bf16.msra.mxu1 %v2894_v42  ;;  %1492 = vmatpush.bf16.msra.mxu3 %v3022_v47  ;;  %v2962_v42 = vor.u32 %v3746_v34, %v2961_v33  ;;  %v2562_v45 = vor.u32 %v3646_v38, %v2561_v37  ;;  %v2945_v47 = vld [vmem:[#allocation5 + $0x388] sm:$0xf]  ;;  %v3666_v17 = vld [vmem:[#allocation5 + $0x134] sm:$0xf0] }
  0x7f   :  { %1467 = vmatpush.bf16.msra.mxu0 %v2750_v58  ;;  %v2946_v55 = vor.u32 %v3742_v48, %v2945_v47  ;;  %v3706_v58 = vld [vmem:[#allocation5 + $0x274] sm:$0xf0]  ;;  %v2897_v23 = vld [vmem:[#allocation5 + $0x328] sm:$0xf]  ;;  %v2611_v47 = vld [vmem:[#allocation5 + $0xf8] sm:$0xf0] }
  0x80   :  { %v2802_v5 = vor.u32 %v3706_v58, %v2801_v56  ;;  %v3698_v21 = vld [vmem:[#allocation5 + $0x234] sm:$0xf0]  ;;  %v2497_v25 = vld [vmem:[#allocation5 + $0x8] sm:$0xf] }
  0x81   :  { %1505 = vmatpush.bf16.msrb.mxu2 %v3150_v54  ;;  %v2818_v54 = vor.u32 %v3710_v46, %v2817_v43  ;;  %v3730_v24 = vld [vmem:[#allocation5 + $0x334] sm:$0xf0]  ;;  %v3249_v33 = vld [vmem:[#allocation5 + $0x5e8] sm:$0xf]  ;;  %v2770_v34 = vor.u32 %v3698_v21, %v2769_v20  ;;  %v3656_v43 = vld [vmem:[#allocation5 + $0xec] sm:$0xf] }
  0x82   :  { %1480 = vmatpush.bf16.msra.mxu1 %v2878_v59  ;;  %1493 = vmatpush.bf16.msra.mxu3 %v3006_v0  ;;  %v2929_v59 = vld [vmem:[#allocation5 + $0x368] sm:$0xf]  ;;  %v3638_v0 = vld [vmem:[#allocation5 + $0x54] sm:$0xf0] }
  0x83   :  { %1519 = vmatpush.bf16.msrb.mxu0 %v3262_v9  ;;  %v2930_v6 = vor.u32 %v3738_v60, %v2929_v59  ;;  %v2530_v9 = vor.u32 %v3638_v0, %v2529_v62  ;;  %v3662_v29 = vld [vmem:[#allocation5 + $0x114] sm:$0xf0]  ;;  %v2753_v38 = vld [vmem:[#allocation5 + $0x208] sm:$0xf]  ;;  %v3688_v59 = vld [vmem:[#allocation5 + $0x1ec] sm:$0xf] }
  0x84   :  { %1468 = vmatmul.bf16.vlgmr.msra.gmra.mxu0 %v4204_v63  ;;  %v3786_v32 = vld [vmem:[#allocation5 + $0x4f4] sm:$0xf0]  ;;  %v3265_v48 = vld [vmem:[#allocation5 + $0x608] sm:$0xf]  ;;  %v2739_v60 = vld [vmem:[#allocation5 + $0x1f8] sm:$0xf0] }
  0x85   :  { %1506 = vmatpush.bf16.msrb.mxu2 %v3134_v12  ;;  %1494 = vmatmul.bf16.vlgmr.msra.gmra.mxu3 %v4220_v30  ;;  %v3734_v12 = vld [vmem:[#allocation5 + $0x354] sm:$0xf0]  ;;  %v3105_v51 = vld [vmem:[#allocation5 + $0x4c8] sm:$0xf]  ;;  %v3652_v62 = vld [vmem:[#allocation5 + $0xcc] sm:$0xf] }
  0x86   :  { %1525 = vmatpush.bf16.msrb.mxu1 %v2610_v1  ;;  %1538 = vmatpush.bf16.msrb.mxu3 %v2738_v8  ;;  %v2657_v1 = vld [vmem:[#allocation5 + $0x148] sm:$0xf]  ;;  %v2914_v19 = vor.u32 %v3734_v12, %v2913_v11  ;;  %v3818_v37 = vld [vmem:[#allocation5 + $0x5f4] sm:$0xf0]  ;;  %v2595_v0 = vld [vmem:[#allocation5 + $0xd8] sm:$0xf0] }
  0x87   :  { %1551 = vmatpush.bf16.msra.mxu0 %v2866_v15  ;;  %1481 = vmatmul.bf16.vlgmr.msra.gmra.mxu1 %v4208_v3  ;;  %v2785_v8 = vld [vmem:[#allocation5 + $0x248] sm:$0xf]  ;;  %v2658_v13 = vor.u32 %v3670_v4, %v2657_v1  ;;  %v3634_v15 = vld [vmem:[#allocation5 + $0x34] sm:$0xf0]  ;;  %v3250_v50 = vor.u32 %v3818_v37, %v3249_v33  ;;  %v3684_v11 = vld [vmem:[#allocation5 + $0x1cc] sm:$0xf] }
  0x88   :  { %1507 = vmatmul.bf16.vlgmr.msrb.gmra.mxu2 %v4222_v35  ;;  %v3694_v39 = vld [vmem:[#allocation5 + $0x214] sm:$0xf0]  ;;  %v3089_v4 = vld [vmem:[#allocation5 + $0x4a8] sm:$0xf]  ;;  %v2723_v12 = vld [vmem:[#allocation5 + $0x1d8] sm:$0xf0] }
  0x89   :  { %1564 = vmatpush.bf16.msra.mxu2 %v2994_v16  ;;  %v2641_v16 = vld [vmem:[#allocation5 + $0x128] sm:$0xf]  ;;  %v3782_v52 = vld [vmem:[#allocation5 + $0x4d4] sm:$0xf0]  ;;  %v2754_v53 = vor.u32 %v3694_v39, %v2753_v38  ;;  %v3676_v33 = vld [vmem:[#allocation5 + $0x18c] sm:$0xf] }
  0x8a   :  { %1526 = vmatpush.bf16.msrb.mxu1 %v2594_v18  ;;  %1539 = vmatpush.bf16.msrb.mxu3 %v2722_v22  ;;  %v2786_v18 = vor.u32 %v3702_v10, %v2785_v8  ;;  %v2514_v22 = vor.u32 %v3634_v15, %v2513_v14  ;;  %v2642_v26 = vor.u32 %v3666_v17, %v2641_v16  ;;  %v3814_v56 = vld [vmem:[#allocation5 + $0x5d4] sm:$0xf0]  ;;  %v3217_v8 = vld [vmem:[#allocation5 + $0x5a8] sm:$0xf]  ;;  %v3648_v14 = vld [vmem:[#allocation5 + $0xac] sm:$0xf] }
  0x8b   :  { %1552 = vmatpush.bf16.msra.mxu0 %v2850_v27  ;;  %v3630_v27 = vld [vmem:[#allocation5 + $0x14] sm:$0xf0]  ;;  %v2598_v10 = vor.u32 %v3652_v62, %v2595_v0  ;;  %v2579_v15 = vld [vmem:[#allocation5 + $0xb8] sm:$0xf0]  ;;  %v3073_v17 = vld [vmem:[#allocation5 + $0x488] sm:$0xf] }
  0x8c   :  { %v2498_v40 = vor.u32 %v3630_v27, %v2497_v25  ;;  %v3201_v20 = vld [vmem:[#allocation5 + $0x588] sm:$0xf]  ;;  %v3806_v21 = vld [vmem:[#allocation5 + $0x594] sm:$0xf0]  ;;  %v3644_v25 = vld [vmem:[#allocation5 + $0x8c] sm:$0xf] }
  0x8d   :  { %1565 = vmatpush.bf16.msra.mxu2 %v2978_v28  ;;  %v2625_v28 = vld [vmem:[#allocation5 + $0x108] sm:$0xf]  ;;  %v3640_v37 = vld [vmem:[#allocation5 + $0x6c] sm:$0xf]  ;;  %v2547_v38 = vld [vmem:[#allocation5 + $0x78] sm:$0xf0] }
  0x8e   :  { %1527 = vmatpush.bf16.msrb.mxu1 %v2578_v31  ;;  %1540 = vmatpush.bf16.msrb.mxu3 %v2706_v36  ;;  %v3121_v31 = vld [vmem:[#allocation5 + $0x4e8] sm:$0xf]  ;;  %v2898_v36 = vor.u32 %v3730_v24, %v2897_v23  ;;  %v3680_v23 = vld [vmem:[#allocation5 + $0x1ac] sm:$0xf]  ;;  %v2707_v24 = vld [vmem:[#allocation5 + $0x1b8] sm:$0xf0] }
  0x8f   :  { %1553 = vmatpush.bf16.msra.mxu0 %v2834_v41  ;;  %v2881_v41 = vld [vmem:[#allocation5 + $0x308] sm:$0xf]  ;;  %v3122_v46 = vor.u32 %v3786_v32, %v3121_v31  ;;  %v3802_v31 = vld [vmem:[#allocation5 + $0x574] sm:$0xf0]  ;;  %v2515_v62 = vld [vmem:[#allocation5 + $0x38] sm:$0xf0] }
  0x90   :  { %v3057_v27 = vld [vmem:[#allocation5 + $0x468] sm:$0xf] }
  0x91   :  { %1566 = vmatpush.bf16.msra.mxu2 %v2962_v42  ;;  %v3726_v42 = vld [vmem:[#allocation5 + $0x314] sm:$0xf0]  ;;  %v3041_v39 = vld [vmem:[#allocation5 + $0x448] sm:$0xf] }
  0x92   :  { %1528 = vmatpush.bf16.msrb.mxu1 %v2562_v45  ;;  %1541 = vmatpush.bf16.msrb.mxu3 %v2690_v49  ;;  %v2626_v45 = vor.u32 %v3662_v29, %v2625_v28  ;;  %v3822_v49 = vld [vmem:[#allocation5 + $0x614] sm:$0xf0]  ;;  %v2710_v29 = vor.u32 %v3680_v23, %v2707_v24  ;;  %v3009_v0 = vld [vmem:[#allocation5 + $0x408] sm:$0xf]  ;;  %v3716_v24 = vld [vmem:[#allocation5 + $0x2cc] sm:$0xf] }
  0x93   :  { %1554 = vmatpush.bf16.msra.mxu0 %v2818_v54  ;;  %v2882_v54 = vor.u32 %v3726_v42, %v2881_v41  ;;  %v3266_v58 = vor.u32 %v3822_v49, %v3265_v48  ;;  %v3770_v28 = vld [vmem:[#allocation5 + $0x474] sm:$0xf0]  ;;  %v3169_v42 = vld [vmem:[#allocation5 + $0x548] sm:$0xf]  ;;  %v3636_v49 = vld [vmem:[#allocation5 + $0x4c] sm:$0xf] }
  0x94   :  { %3272 = vmatmul.msk.bf16.vlgmr.msrb.gmra.mxu0 %vm1340_vm0, %v4216_v44 }
  0x95   :  { %1567 = vmatpush.bf16.msra.mxu2 %v2946_v55  ;;  %v3233_v55 = vld [vmem:[#allocation5 + $0x5c8] sm:$0xf] }
  0x96   :  { %1529 = vmatpush.bf16.msrb.mxu1 %v2546_v57  ;;  %1542 = vmatpush.bf16.msrb.mxu3 %v2674_v61  ;;  %v2614_v57 = vor.u32 %v3656_v43, %v2611_v47  ;;  %v3106_v61 = vor.u32 %v3782_v52, %v3105_v51  ;;  %v3234_v1 = vor.u32 %v3814_v56, %v3233_v55  ;;  %v3798_v43 = vld [vmem:[#allocation5 + $0x554] sm:$0xf0]  ;;  %v2675_v47 = vld [vmem:[#allocation5 + $0x178] sm:$0xf0]  ;;  %v3025_v52 = vld [vmem:[#allocation5 + $0x428] sm:$0xf] }
  0x97   :  { %1555 = vmatpush.bf16.msra.mxu0 %v2802_v5  ;;  %v3778_v5 = vld [vmem:[#allocation5 + $0x4b4] sm:$0xf0]  ;;  %v3170_v51 = vor.u32 %v3798_v43, %v3169_v42  ;;  %v3153_v55 = vld [vmem:[#allocation5 + $0x528] sm:$0xf]  ;;  %v3812_v43 = vld [vmem:[#allocation5 + $0x5cc] sm:$0xf] }
  0x98   :  { %v3794_v56 = vld [vmem:[#allocation5 + $0x534] sm:$0xf0] }
  0x99   :  { %1568 = vmatpush.bf16.msra.mxu2 %v2930_v6  ;;  %v2742_v6 = vor.u32 %v3688_v59, %v2739_v60  ;;  %v2659_v59 = vld [vmem:[#allocation5 + $0x158] sm:$0xf0] }
  0x9a   :  { %1530 = vmatpush.bf16.msrb.mxu1 %v2530_v9  ;;  %1543 = vmatpush.bf16.msrb.mxu3 %v2658_v13  ;;  %v3810_v9 = vld [vmem:[#allocation5 + $0x5b4] sm:$0xf0]  ;;  %v3090_v13 = vor.u32 %v3778_v5, %v3089_v4  ;;  %v3137_v5 = vld [vmem:[#allocation5 + $0x508] sm:$0xf] }
  0x9b   :  { %1556 = vmatpush.bf16.msra.mxu0 %v2786_v18  ;;  %v3218_v16 = vor.u32 %v3810_v9, %v3217_v8  ;;  %v3774_v18 = vld [vmem:[#allocation5 + $0x494] sm:$0xf0]  ;;  %v3720_v9 = vld [vmem:[#allocation5 + $0x2ec] sm:$0xf] }
  0x9c   :  { %v3758_v4 = vld [vmem:[#allocation5 + $0x414] sm:$0xf0] }
  0x9d   :  { %1569 = vmatpush.bf16.msra.mxu2 %v2914_v19  ;;  %v2726_v19 = vor.u32 %v3684_v11, %v2723_v12  ;;  %v3752_v11 = vld [vmem:[#allocation5 + $0x3ec] sm:$0xf] }
  0x9e   :  { %1531 = vmatpush.bf16.msrb.mxu1 %v2514_v22  ;;  %1544 = vmatpush.bf16.msrb.mxu3 %v2642_v26  ;;  %v2582_v22 = vor.u32 %v3648_v14, %v2579_v15  ;;  %v2563_v26 = vld [vmem:[#allocation5 + $0x98] sm:$0xf0]  ;;  %v3664_v14 = vld [vmem:[#allocation5 + $0x12c] sm:$0xf] }
  0x9f   :  { %1557 = vmatpush.bf16.msra.mxu0 %v2770_v34  ;;  %v2566_v32 = vor.u32 %v3644_v25, %v2563_v26  ;;  %v2691_v34 = vld [vmem:[#allocation5 + $0x198] sm:$0xf0]  ;;  %v3748_v25 = vld [vmem:[#allocation5 + $0x3cc] sm:$0xf] }
  0xa0   :  { %v2694_v41 = vor.u32 %v3676_v33, %v2691_v34  ;;  %v2643_v15 = vld [vmem:[#allocation5 + $0x138] sm:$0xf0]  ;;  %v3780_v33 = vld [vmem:[#allocation5 + $0x4cc] sm:$0xf] }
  0xa1   :  { %1570 = vmatpush.bf16.msra.mxu2 %v2898_v36  ;;  %v3058_v36 = vor.u32 %v3770_v28, %v3057_v27  ;;  %v2646_v23 = vor.u32 %v3664_v14, %v2643_v15  ;;  %v3660_v27 = vld [vmem:[#allocation5 + $0x10c] sm:$0xf]  ;;  %v2627_v28 = vld [vmem:[#allocation5 + $0x118] sm:$0xf0] }
  0xa2   :  { %1532 = vmatpush.bf16.msrb.mxu1 %v2498_v40  ;;  %1545 = vmatpush.bf16.msrb.mxu3 %v2626_v45  ;;  %v3766_v40 = vld [vmem:[#allocation5 + $0x454] sm:$0xf0]  ;;  %v2550_v45 = vor.u32 %v3640_v37, %v2547_v38  ;;  %v3107_v34 = vld [vmem:[#allocation5 + $0x4d8] sm:$0xf0]  ;;  %v2630_v37 = vor.u32 %v3660_v27, %v2627_v28  ;;  %v3712_v38 = vld [vmem:[#allocation5 + $0x2ac] sm:$0xf] }
  0xa3   :  { %1558 = vmatpush.bf16.msra.mxu0 %v2754_v53  ;;  %v3042_v48 = vor.u32 %v3766_v40, %v3041_v39  ;;  %v3762_v53 = vld [vmem:[#allocation5 + $0x434] sm:$0xf0]  ;;  %v3744_v40 = vld [vmem:[#allocation5 + $0x3ac] sm:$0xf]  ;;  %v3110_v42 = vor.u32 %v3780_v33, %v3107_v34  ;;  %v2771_v28 = vld [vmem:[#allocation5 + $0x238] sm:$0xf0] }
  0xa4   :  { %v3026_v60 = vor.u32 %v3762_v53, %v3025_v52  ;;  %v3740_v52 = vld [vmem:[#allocation5 + $0x38c] sm:$0xf]  ;;  %v2947_v53 = vld [vmem:[#allocation5 + $0x398] sm:$0xf0] }
  0xa5   :  { %1571 = vmatpush.bf16.msra.mxu2 %v2882_v54  ;;  %1546 = vmatmul.bf16.vlgmr.msrb.gmra.mxu3 %v4213_v7  ;;  %v3074_v7 = vor.u32 %v3774_v18, %v3073_v17  ;;  %v3628_v17 = vld [vmem:[#allocation5 + $0xc] sm:$0xf]  ;;  %v2499_v18 = vld [vmem:[#allocation5 + $0x18] sm:$0xf0] }
  0xa6   :  { %1577 = vmatpush.bf16.msra.mxu1 %v3122_v46  ;;  %1590 = vmatpush.bf16.msra.mxu3 %v3250_v50  ;;  %v3672_v46 = vld [vmem:[#allocation5 + $0x16c] sm:$0xf]  ;;  %v2531_v50 = vld [vmem:[#allocation5 + $0x58] sm:$0xf0]  ;;  %v2502_v26 = vor.u32 %v3628_v17, %v2499_v18 }
  0xa7   :  { %1610 = vmatpush.bf16.msrb.mxu0 %v3266_v58  ;;  %1533 = vmatmul.bf16.vlgmr.msrb.gmra.mxu1 %v4206_v2  ;;  %v3185_v2 = vld [vmem:[#allocation5 + $0x568] sm:$0xf]  ;;  %v2678_v54 = vor.u32 %v3672_v46, %v2675_v47  ;;  %v3668_v58 = vld [vmem:[#allocation5 + $0x14c] sm:$0xf] }
  0xa8   :  { %1559 = vmatmul.bf16.vlgmr.msra.gmra.mxu0 %v4204_v63  ;;  %1572 = vmatmul.bf16.vlgmr.msra.gmra.mxu2 %v4208_v3  ;;  %v3202_v63 = vor.u32 %v3806_v21, %v3201_v20  ;;  %v3186_v3 = vor.u32 %v3802_v31, %v3185_v2  ;;  %v2662_v8 = vor.u32 %v3668_v58, %v2659_v59  ;;  %v3784_v21 = vld [vmem:[#allocation5 + $0x4ec] sm:$0xf]  ;;  %v3251_v31 = vld [vmem:[#allocation5 + $0x5f8] sm:$0xf0] }
  0xa9   :  { %1616 = vmatpush.bf16.msrb.mxu2 %v2614_v57  ;;  %v2534_v57 = vor.u32 %v3636_v49, %v2531_v50  ;;  %v3816_v2 = vld [vmem:[#allocation5 + $0x5ec] sm:$0xf]  ;;  %v3075_v59 = vld [vmem:[#allocation5 + $0x498] sm:$0xf0] }
  0xaa   :  { %1578 = vmatpush.bf16.msra.mxu1 %v3106_v61  ;;  %1591 = vmatpush.bf16.msra.mxu3 %v3234_v1  ;;  %v3632_v61 = vld [vmem:[#allocation5 + $0x2c] sm:$0xf]  ;;  %v3154_v1 = vor.u32 %v3794_v56, %v3153_v55  ;;  %v3254_v39 = vor.u32 %v3816_v2, %v3251_v31  ;;  %v3219_v56 = vld [vmem:[#allocation5 + $0x5b8] sm:$0xf0] }
  0xab   :  { %1629 = vmatpush.bf16.msra.mxu0 %v2742_v6  ;;  %v3790_v6 = vld [vmem:[#allocation5 + $0x514] sm:$0xf0]  ;;  %v2518_v12 = vor.u32 %v3632_v61, %v2515_v62  ;;  %v3776_v47 = vld [vmem:[#allocation5 + $0x4ac] sm:$0xf]  ;;  %v2950_v61 = vor.u32 %v3740_v52, %v2947_v53  ;;  %v2899_v31 = vld [vmem:[#allocation5 + $0x338] sm:$0xf0] }
  0xac   :  { %v3708_v50 = vld [vmem:[#allocation5 + $0x28c] sm:$0xf]  ;;  %v3155_v53 = vld [vmem:[#allocation5 + $0x538] sm:$0xf0] }
  0xad   :  { %1617 = vmatpush.bf16.msrb.mxu2 %v2598_v10  ;;  %v2867_v10 = vld [vmem:[#allocation5 + $0x2f8] sm:$0xf0]  ;;  %v3808_v55 = vld [vmem:[#allocation5 + $0x5ac] sm:$0xf] }
  0xae   :  { %1579 = vmatpush.bf16.msra.mxu1 %v3090_v13  ;;  %1592 = vmatpush.bf16.msra.mxu3 %v3218_v16  ;;  %v2995_v13 = vld [vmem:[#allocation5 + $0x3f8] sm:$0xf0]  ;;  %v3010_v16 = vor.u32 %v3758_v4, %v3009_v0  ;;  %v2870_v20 = vor.u32 %v3720_v9, %v2867_v10  ;;  %v3772_v58 = vld [vmem:[#allocation5 + $0x48c] sm:$0xf] }
  0xaf   :  { %1630 = vmatpush.bf16.msra.mxu0 %v2726_v19  ;;  %v3138_v19 = vor.u32 %v3790_v6, %v3137_v5  ;;  %v3704_v62 = vld [vmem:[#allocation5 + $0x26c] sm:$0xf]  ;;  %v2803_v0 = vld [vmem:[#allocation5 + $0x278] sm:$0xf0] }
  0xb0   :  { %v3736_v4 = vld [vmem:[#allocation5 + $0x36c] sm:$0xf]  ;;  %v2931_v5 = vld [vmem:[#allocation5 + $0x378] sm:$0xf0] }
  0xb1   :  { %1618 = vmatpush.bf16.msrb.mxu2 %v2582_v22  ;;  %v3123_v22 = vld [vmem:[#allocation5 + $0x4f8] sm:$0xf0]  ;;  %v3804_v9 = vld [vmem:[#allocation5 + $0x58c] sm:$0xf]  ;;  %v2934_v14 = vor.u32 %v3736_v4, %v2931_v5  ;;  %v3325_v5 = vld [vmem:[#allocation8 + $0x60] sm:$0xf] }
  0xb2   :  { %1580 = vmatpush.bf16.msra.mxu1 %v3074_v7  ;;  %1593 = vmatpush.bf16.msra.mxu3 %v3202_v63  ;;  %v2851_v7 = vld [vmem:[#allocation5 + $0x2d8] sm:$0xf0]  ;;  %v3700_v15 = vld [vmem:[#allocation5 + $0x24c] sm:$0xf] }
  0xb3   :  { %1631 = vmatpush.bf16.msra.mxu0 %v2710_v29  ;;  %v2979_v63 = vld [vmem:[#allocation5 + $0x3d8] sm:$0xf0]  ;;  %v3126_v29 = vor.u32 %v3784_v21, %v3123_v22  ;;  %v3800_v22 = vld [vmem:[#allocation5 + $0x56c] sm:$0xf] }
  0xb4   :  { %v3203_v10 = vld [vmem:[#allocation5 + $0x598] sm:$0xf0]  ;;  %v3696_v27 = vld [vmem:[#allocation5 + $0x22c] sm:$0xf] }
  0xb5   :  { %1619 = vmatpush.bf16.msrb.mxu2 %v2566_v32  ;;  %v2854_v32 = vor.u32 %v3716_v24, %v2851_v7  ;;  %v3206_v17 = vor.u32 %v3804_v9, %v3203_v10  ;;  %v3764_v7 = vld [vmem:[#allocation5 + $0x44c] sm:$0xf]  ;;  %v3139_v10 = vld [vmem:[#allocation5 + $0x518] sm:$0xf0] }
  0xb6   :  { %1581 = vmatpush.bf16.msra.mxu1 %v3058_v36  ;;  %1594 = vmatpush.bf16.msra.mxu3 %v3186_v3  ;;  %v2982_v36 = vor.u32 %v3748_v25, %v2979_v63  ;;  %v2835_v3 = vld [vmem:[#allocation5 + $0x2b8] sm:$0xf0]  ;;  %v3728_v2 = vld [vmem:[#allocation5 + $0x32c] sm:$0xf] }
  0xb7   :  { %1632 = vmatpush.bf16.msra.mxu0 %v2694_v41  ;;  %v2963_v41 = vld [vmem:[#allocation5 + $0x3b8] sm:$0xf0]  ;;  %v2838_v46 = vor.u32 %v3712_v38, %v2835_v3  ;;  %v3796_v34 = vld [vmem:[#allocation5 + $0x54c] sm:$0xf]  ;;  %v2774_v38 = vor.u32 %v3696_v27, %v2771_v28  ;;  %v3309_v27 = vld [vmem:[#allocation8 + $0x40] sm:$0xf] }
  0xb8   :  { %3273 = vmatmul.msk.bf16.vlgmr.msrb.gmra.mxu0 %vm1340_vm0, %v4216_v44  ;;  %v2998_v44 = vor.u32 %v3752_v11, %v2995_v13  ;;  %v2966_v49 = vor.u32 %v3744_v40, %v2963_v41  ;;  %v2806_v11 = vor.u32 %v3704_v62, %v2803_v0  ;;  %v3059_v13 = vld [vmem:[#allocation5 + $0x478] sm:$0xf0]  ;;  %v3760_v3 = vld [vmem:[#allocation5 + $0x42c] sm:$0xf]  ;;  %v2902_v41 = vor.u32 %v3728_v2, %v2899_v31  ;;  %v3373_v31 = vld [vmem:[#allocation8 + $0xc0] sm:$0xf] }
  0xb9   :  { %1620 = vmatpush.bf16.msrb.mxu2 %v2550_v45  ;;  %v3235_v45 = vld [vmem:[#allocation5 + $0x5d8] sm:$0xf0]  ;;  %v3692_v40 = vld [vmem:[#allocation5 + $0x20c] sm:$0xf] }
  0xba   :  { %1582 = vmatpush.bf16.msra.mxu1 %v3042_v48  ;;  %1595 = vmatpush.bf16.msra.mxu3 %v3170_v51  ;;  %v3091_v48 = vld [vmem:[#allocation5 + $0x4b8] sm:$0xf0]  ;;  %v3792_v52 = vld [vmem:[#allocation5 + $0x52c] sm:$0xf] }
  0xbb   :  { %1633 = vmatpush.bf16.msra.mxu0 %v2678_v54  ;;  %v2819_v51 = vld [vmem:[#allocation5 + $0x298] sm:$0xf0]  ;;  %v3788_v9 = vld [vmem:[#allocation5 + $0x50c] sm:$0xf] }
  0xbc   :  { %v3934_v54 = vld [vmem:[#allocation1] sm:$0xff]  ;;  %v3832_v28 = vld [vmem:[#allocation8 + $0x44] sm:$0xf0] }
  0xbd   :  { %1621 = vmatpush.bf16.msrb.mxu2 %v2534_v57  ;;  %v2822_v57 = vor.u32 %v3708_v50, %v2819_v51  ;;  %v3043_v25 = vld [vmem:[#allocation5 + $0x458] sm:$0xf0] }
  0xbe   :  { %1583 = vmatpush.bf16.msra.mxu1 %v3026_v60  ;;  %1596 = vmatpush.bf16.msra.mxu3 %v3154_v1  ;;  %v3935_v60 = vld [vmem:[#allocation1 + $0x9] sm:$0xff]  ;;  %v3222_v1 = vor.u32 %v3808_v55, %v3219_v56  ;;  %v3046_v33 = vor.u32 %v3764_v7, %v3043_v25  ;;  %v3011_v56 = vld [vmem:[#allocation5 + $0x418] sm:$0xf0] }
  0xbf   :  { %1634 = vmatpush.bf16.msra.mxu0 %v2662_v8  ;;  %v3078_v8 = vor.u32 %v3772_v58, %v3075_v59  ;;  %v3756_v55 = vld [vmem:[#allocation5 + $0x40c] sm:$0xf]  ;;  %v3854_v62 = vld [vmem:[#allocation8 + $0xf4] sm:$0xf0]  ;;  %v3938_v25 = vld [vmem:[#allocation1 + $0x24] sm:$0xff] }
  0xc0   :  { %v3014_v4 = vor.u32 %v3756_v55, %v3011_v56  ;;  %v3850_v7 = vld [vmem:[#allocation8 + $0xd4] sm:$0xf0] }
  0xc1   :  { %1622 = vmatpush.bf16.msrb.mxu2 %v2518_v12  ;;  %v3768_v12 = vld [vmem:[#allocation5 + $0x46c] sm:$0xf] }
  0xc2   :  { %1584 = vmatpush.bf16.msra.mxu1 %v3010_v16  ;;  %1597 = vmatpush.bf16.msra.mxu3 %v3138_v19  ;;  %v2787_v16 = vld [vmem:[#allocation5 + $0x258] sm:$0xf0]  ;;  %v3732_v19 = vld [vmem:[#allocation5 + $0x34c] sm:$0xf]  ;;  %v3062_v21 = vor.u32 %v3768_v12, %v3059_v13  ;;  %v3389_v13 = vld [vmem:[#allocation8 + $0xe0] sm:$0xf] }
  0xc3   :  { %1635 = vmatpush.bf16.msra.mxu0 %v2646_v23  ;;  %v2790_v24 = vor.u32 %v3700_v15, %v2787_v16  ;;  %v3936_v16 = vld [vmem:[#allocation1 + $0x12] sm:$0xff] }
  0xc5   :  { %1585 = vmatmul.bf16.vlgmr.msra.gmra.mxu1 %v4220_v30  ;;  %1623 = vmatpush.bf16.msrb.mxu2 %v2502_v26  ;;  %v3238_v30 = vor.u32 %v3812_v43, %v3235_v45  ;;  %v4242_v6 = vpop.f32.mrf.mxu0  ;;  %v3724_v43 = vld [vmem:[#allocation5 + $0x30c] sm:$0xf]  ;;  %v2883_v45 = vld [vmem:[#allocation5 + $0x318] sm:$0xf0] }
  0xc6   :  { %1642 = vmatpush.bf16.msrb.mxu1 %v2870_v20  ;;  %1655 = vmatpush.bf16.msrb.mxu3 %v2998_v44  ;;  %v2915_v20 = vld [vmem:[#allocation5 + $0x358] sm:$0xf0]  ;;  %v2886_v58 = vor.u32 %v3724_v43, %v2883_v45 }
  0xc7   :  { %1598 = vmatmul.bf16.vlgmr.msra.gmra.mxu3 %v4222_v35  ;;  %1636 = vmatpush.bf16.msra.mxu0 %v2630_v37  ;;  %v3094_v35 = vor.u32 %v3776_v47, %v3091_v48  ;;  %v3187_v44 = vld [vmem:[#allocation5 + $0x578] sm:$0xf0]  ;;  %v2918_v26 = vor.u32 %v3732_v19, %v2915_v20  ;;  %v4250_v37 = vld [vmem:[#allocation7] sm:$0xf]  ;;  %v3333_v47 = vld [vmem:[#allocation8 + $0x70] sm:$0xf] }
  0xc8   :  { %1624 = vmatmul.bf16.vlgmr.msrb.gmra.mxu2 %v3934_v54  ;;  %v4244_v18 = vpop.f32.mrf.mxu1  ;;  %v3820_v48 = vld [vmem:[#allocation5 + $0x60c] sm:$0xf]  ;;  %v3317_v19 = vld [vmem:[#allocation8 + $0x50] sm:$0xf]  ;;  %v3834_v20 = vld [vmem:[#allocation8 + $0x54] sm:$0xf0] }
  0xc9   :  { %1668 = vmatpush.bf16.msra.mxu2 %v3126_v29  ;;  %v3190_v29 = vor.u32 %v3800_v22, %v3187_v44  ;;  %v3846_v43 = vld [vmem:[#allocation8 + $0xb4] sm:$0xf0] }
  0xca   :  { %1643 = vmatpush.bf16.msrb.mxu1 %v2854_v32  ;;  %1656 = vmatpush.bf16.msrb.mxu3 %v2982_v36  ;;  %v3171_v36 = vld [vmem:[#allocation5 + $0x558] sm:$0xf0] }
  0xcb   :  { %1681 = vmatpush.bf16.msrb.mxu0 %v3254_v39  ;;  %v4246_v23 = vpop.f32.mrf.mxu2  ;;  %v3027_v39 = vld [vmem:[#allocation5 + $0x438] sm:$0xf0] }
  0xcc   :  { %1637 = vmatmul.bf16.vlgmr.msra.gmra.mxu0 %v3935_v60  ;;  %v4248_v63 = vpop.f32.mrf.mxu3  ;;  %v3030_v51 = vor.u32 %v3760_v3, %v3027_v39 }
  0xcd   :  { %1669 = vmatpush.bf16.msra.mxu2 %v3110_v42  ;;  %v1354_v32 = vpop.f32.mrf.mxu0  ;;  %v2755_v42 = vld [vmem:[#allocation5 + $0x218] sm:$0xf0] }
  0xce   :  { %1644 = vmatpush.bf16.msrb.mxu1 %v2838_v46  ;;  %1657 = vmatpush.bf16.msrb.mxu3 %v2966_v49  ;;  %v3174_v46 = vor.u32 %v3796_v34, %v3171_v36  ;;  %v3267_v49 = vld [vmem:[#allocation5 + $0x618] sm:$0xf0]  ;;  %v3848_v32 = vld [vmem:[#allocation8 + $0xc4] sm:$0xf0]  ;;  %v3310_v34 = vor.u32 %v3832_v28, %v3309_v27  ;;  %v3301_v36 = vld [vmem:[#allocation8 + $0x30] sm:$0xf] }
  0xcf   :  { %1682 = vmatpush.bf16.msrb.mxu0 %v3238_v30  ;;  %v3838_v30 = vld [vmem:[#allocation8 + $0x74] sm:$0xf0]  ;;  %v3270_v59 = vor.u32 %v3820_v48, %v3267_v49  ;;  %v3357_v49 = vld [vmem:[#allocation8 + $0xa0] sm:$0xf]  ;;  %v3461_v28 = vld [vmem:[#allocation8 + $0x170] sm:$0xf] }
  0xd0   :  { %v1367_v50 = vpop.f32.mrf.mxu1  ;;  %v3334_v0 = vor.u32 %v3838_v30, %v3333_v47  ;;  %v3828_v47 = vld [vmem:[#allocation8 + $0x24] sm:$0xf0] }
  0xd1   :  { %1670 = vmatpush.bf16.msra.mxu2 %v3094_v35  ;;  %v2758_v35 = vor.u32 %v3692_v40, %v2755_v42  ;;  %v3374_v40 = vor.u32 %v3848_v32, %v3373_v31  ;;  %v3365_v42 = vld [vmem:[#allocation8 + $0xb0] sm:$0xf]  ;;  %v3844_v50 = vld [vmem:[#allocation8 + $0xa4] sm:$0xf0]  ;;  %v3383_v31 = vld [vmem:[#allocation8 + $0xd8] sm:$0xf0] }
  0xd2   :  { %1645 = vmatpush.bf16.msrb.mxu1 %v2822_v57  ;;  %1658 = vmatpush.bf16.msrb.mxu3 %v2950_v61  ;;  %v328_v57 = vperm.slane %v4250_v37, 0  ;;  %v3397_v61 = vld [vmem:[#allocation8 + $0xf0] sm:$0xf]  ;;  %v3366_v48 = vor.u32 %v3846_v43, %v3365_v42  ;;  %v3358_v56 = vor.u32 %v3844_v50, %v3357_v49  ;;  %v3870_v32 = vld [vmem:[#allocation8 + $0x174] sm:$0xf0] }
  0xd3   :  { %1683 = vmatpush.bf16.msrb.mxu0 %v3222_v1  ;;  %v1380_v54 = vpop.f32.mrf.mxu2  ;;  %v3158_v1 = vor.u32 %v3792_v52, %v3155_v53  ;;  %v3940_v52 = vld [vmem:[#allocation1 + $0x36] sm:$0xff]  ;;  %v3303_v43 = vld [vmem:[#allocation8 + $0x38] sm:$0xf0] }
  0xd4   :  { %v1393_v60 = vpop.f32.mrf.mxu3  ;;  %v1353_v12 = vadd.f32 %v4242_v6, %v328_v57  ;;  %v3285_v53 = vld [vmem:[#allocation8 + $0x10] sm:$0xf]  ;;  %v3826_v54 = vld [vmem:[#allocation8 + $0x14] sm:$0xf0]  ;;  %v3829_v42 = vld [vmem:[#allocation8 + $0x34] sm:$0xf] }
  0xd5   :  { %1671 = vmatpush.bf16.msra.mxu2 %v3078_v8  ;;  %v3836_v8 = vld [vmem:[#allocation8 + $0x64] sm:$0xf0]  ;;  %v3286_v60 = vor.u32 %v3826_v54, %v3285_v53  ;;  %v3845_v50 = vld [vmem:[#allocation8 + $0xb4] sm:$0xf]  ;;  %v3866_v53 = vld [vmem:[#allocation8 + $0x154] sm:$0xf0] }
  0xd6   :  { %1646 = vmatpush.bf16.msrb.mxu1 %v2806_v11  ;;  %1659 = vmatpush.bf16.msrb.mxu3 %v2934_v14  ;;  %v3398_v11 = vor.u32 %v3854_v62, %v3397_v61  ;;  %v3852_v14 = vld [vmem:[#allocation8 + $0xe4] sm:$0xf0]  ;;  %v3326_v15 = vor.u32 %v3836_v8, %v3325_v5  ;;  %v1366_v6 = vadd.f32 %v4244_v18, %v1353_v12  ;;  %v3277_v62 = vld [vmem:[#allocation8] sm:$0xf]  ;;  %v3399_v12 = vld [vmem:[#allocation8 + $0xf8] sm:$0xf0] }
  0xd7   :  { %1684 = vmatpush.bf16.msrb.mxu0 %v3206_v17  ;;  %v3142_v17 = vor.u32 %v3788_v9, %v3139_v10  ;;  %v3390_v44 = vor.u32 %v3852_v14, %v3389_v13  ;;  %v3341_v8 = vld [vmem:[#allocation8 + $0x80] sm:$0xf]  ;;  %v3840_v9 = vld [vmem:[#allocation8 + $0x84] sm:$0xf0]  ;;  %v3827_v54 = vld [vmem:[#allocation8 + $0x24] sm:$0xf] }
  0xd8   :  { %v1379_v2 = vadd.f32 %v4246_v23, %v1366_v6  ;;  %v3391_v6 = vld [vmem:[#allocation8 + $0xe8] sm:$0xf0] }
  0xd9   :  { %1672 = vmatpush.bf16.msra.mxu2 %v3062_v21  ;;  %v3937_v21 = vld [vmem:[#allocation1 + $0x1b] sm:$0xff] }
  0xda   :  { %1647 = vmatpush.bf16.msrb.mxu1 %v2790_v24  ;;  %1660 = vmatpush.bf16.msrb.mxu3 %v2918_v26  ;;  %v3381_v24 = vld [vmem:[#allocation8 + $0xd0] sm:$0xf]  ;;  %v3318_v26 = vor.u32 %v3834_v20, %v3317_v19  ;;  %v3342_v19 = vor.u32 %v3840_v9, %v3341_v8 }
  0xdb   :  { %1685 = vmatpush.bf16.msrb.mxu0 %v3190_v29  ;;  %v1430_v22 = vpop.f32.mrf.mxu2  ;;  %v3382_v29 = vor.u32 %v3850_v7, %v3381_v24 }
  0xdd   :  { %1673 = vmatpush.bf16.msra.mxu2 %v3046_v33  ;;  %v3939_v33 = vld [vmem:[#allocation1 + $0x2d] sm:$0xff] }
  0xde   :  { %1648 = vmatpush.bf16.msrb.mxu1 %v2774_v38  ;;  %1661 = vmatpush.bf16.msrb.mxu3 %v2902_v41  ;;  %v3830_v38 = vld [vmem:[#allocation8 + $0x34] sm:$0xf0]  ;;  %v1392_v41 = vadd.f32 %v4248_v63, %v1379_v2  ;;  %v3849_v2 = vld [vmem:[#allocation8 + $0xd4] sm:$0xf] }
  0xdf   :  { %1686 = vmatpush.bf16.msrb.mxu0 %v3174_v46  ;;  %v3302_v45 = vor.u32 %v3830_v38, %v3301_v36  ;;  %v3293_v46 = vld [vmem:[#allocation8 + $0x20] sm:$0xf]  ;;  %v3311_v36 = vld [vmem:[#allocation8 + $0x48] sm:$0xf0]  ;;  %v3386_v38 = vor.u32 %v3849_v2, %v3383_v31  ;;  %v3858_v2 = vld [vmem:[#allocation8 + $0x114] sm:$0xf0] }
  0xe1   :  { %1674 = vmatpush.bf16.msra.mxu2 %v3030_v51  ;;  %v1404_v18 = vpop.f32.mrf.mxu0  ;;  %v3294_v51 = vor.u32 %v3828_v47, %v3293_v46 }
  0xe2   :  { %1649 = vmatpush.bf16.msrb.mxu1 %v2758_v35  ;;  %1662 = vmatpush.bf16.msrb.mxu3 %v2886_v58  ;;  %v1417_v3 = vpop.f32.mrf.mxu1  ;;  %v1405_v23 = vadd.f32 %v1404_v18, %v1392_v41  ;;  %v3349_v58 = vld [vmem:[#allocation8 + $0x90] sm:$0xf]  ;;  %v3831_v18 = vld [vmem:[#allocation8 + $0x44] sm:$0xf] }
  0xe3   :  { %1687 = vmatpush.bf16.msrb.mxu0 %v3158_v1  ;;  %v1432_v39 = vpop.f32.mrf.mxu2  ;;  %v3837_v1 = vld [vmem:[#allocation8 + $0x74] sm:$0xf]  ;;  %v3314_v41 = vor.u32 %v3831_v18, %v3311_v36 }
  0xe4   :  { %v1418_v30 = vadd.f32 %v1417_v3, %v1405_v23  ;;  %v3847_v39 = vld [vmem:[#allocation8 + $0xc4] sm:$0xf]  ;;  %v3868_v23 = vld [vmem:[#allocation8 + $0x164] sm:$0xf0] }
  0xe5   :  { %1650 = vmatmul.bf16.vlgmr.msrb.gmra.mxu1 %v3936_v16  ;;  %1675 = vmatpush.bf16.msra.mxu2 %v3014_v4  ;;  %v3335_v4 = vld [vmem:[#allocation8 + $0x78] sm:$0xf0]  ;;  %v3835_v16 = vld [vmem:[#allocation8 + $0x64] sm:$0xf] }
  0xe6   :  { %1701 = vmatpush.bf16.msra.mxu1 %v3270_v59  ;;  %2105 = vmatpush.bf16.msra.mxu3 %v3334_v0  ;;  %v3842_v59 = vld [vmem:[#allocation8 + $0x94] sm:$0xf0]  ;;  %v1431_v61 = vadd.f32 %v1430_v22, %v1418_v30  ;;  %v3824_v0 = vld [vmem:[#allocation8 + $0x4] sm:$0xf0]  ;;  %v3338_v14 = vor.u32 %v3837_v1, %v3335_v4  ;;  %v329_v22 = vperm.slane %v4250_v37, 1  ;;  %v3306_v30 = vor.u32 %v3829_v42, %v3303_v43 }
  0xe7   :  { %1663 = vmatmul.bf16.vlgmr.msrb.gmra.mxu3 %v3937_v21  ;;  %1688 = vmatpush.bf16.msrb.mxu0 %v3142_v17  ;;  %v3350_v5 = vor.u32 %v3842_v59, %v3349_v58  ;;  %v3278_v10 = vor.u32 %v3824_v0, %v3277_v62  ;;  %v3327_v17 = vld [vmem:[#allocation8 + $0x68] sm:$0xf0]  ;;  %v3843_v58 = vld [vmem:[#allocation8 + $0xa4] sm:$0xf]  ;;  %v3287_v62 = vld [vmem:[#allocation8 + $0x18] sm:$0xf0] }
  0xe8   :  { %1676 = vmatmul.bf16.vlgmr.msra.gmra.mxu2 %v3938_v25  ;;  %v1707_v13 = vmax.f32 %v1431_v61, 0.0  ;;  %v3330_v7 = vor.u32 %v3835_v16, %v3327_v17  ;;  %v3833_v25 = vld [vmem:[#allocation8 + $0x54] sm:$0xf]  ;;  %v3359_v59 = vld [vmem:[#allocation8 + $0xa8] sm:$0xf0] }
  0xe9   :  { %v1406_v63 = vpop.f32.mrf.mxu0  ;;  %v3825_v61 = vld [vmem:[#allocation8 + $0x14] sm:$0xf]  ;;  %v3437_v0 = vld [vmem:[#allocation8 + $0x140] sm:$0xf]  ;;  %v3864_v1 = vld [vmem:[#allocation8 + $0x144] sm:$0xf0]  ;;  %v3362_v8 = vor.u32 %v3843_v58, %v3359_v59 }
  0xea   :  { %2118 = vmatpush.bf16.msrb.mxu1 %v3398_v11  ;;  %2106 = vmatpush.bf16.msra.mxu3 %v3326_v15  ;;  %v1443_v35 = vpop.f32.mrf.mxu3  ;;  %v1419_v55 = vpop.f32.mrf.mxu1  ;;  %v3853_v11 = vld [vmem:[#allocation8 + $0xf4] sm:$0xf]  ;;  %v4259_v24 = vpack.c.bf16 %v1707_v13, %v1707_v13  ;;  %v3295_v63 = vld [vmem:[#allocation8 + $0x28] sm:$0xf0]  ;;  %v3438_v9 = vor.u32 %v3864_v1, %v3437_v0  ;;  %v3351_v13 = vld [vmem:[#allocation8 + $0x98] sm:$0xf0] }
  0xeb   :  { %1689 = vmatmul.bf16.vlgmr.msrb.gmra.mxu0 %v3939_v33  ;;  %v1456_v57 = vpop.f32.mrf.mxu2  ;;  %v3402_v21 = vor.u32 %v3853_v11, %v3399_v12  ;;  %v3841_v12 = vld [vmem:[#allocation8 + $0x94] sm:$0xf]  ;;  %v3429_v16 = vld [vmem:[#allocation8 + $0x130] sm:$0xf]  ;;  %v3862_v17 = vld [vmem:[#allocation8 + $0x134] sm:$0xf0] }
  0xec   :  { %v3869_v43 = vld [vmem:[#allocation8 + $0x174] sm:$0xf]  ;;  %v3439_v58 = vld [vmem:[#allocation8 + $0x148] sm:$0xf0] }
  0xed   :  { %v3861_v0 = vld [vmem:[#allocation8 + $0x134] sm:$0xf] }
  0xee   :  { %2119 = vmatpush.bf16.msrb.mxu1 %v3390_v44  ;;  %2107 = vmatpush.bf16.msra.mxu3 %v3318_v26  ;;  %v3851_v44 = vld [vmem:[#allocation8 + $0xe4] sm:$0xf]  ;;  %v3319_v26 = vld [vmem:[#allocation8 + $0x58] sm:$0xf0] }
  0xef   :  { %v3394_v27 = vor.u32 %v3851_v44, %v3391_v6  ;;  %v3322_v33 = vor.u32 %v3833_v25, %v3319_v26  ;;  %v3354_v6 = vor.u32 %v3841_v12, %v3351_v13  ;;  %v3839_v25 = vld [vmem:[#allocation8 + $0x84] sm:$0xf]  ;;  %v3343_v26 = vld [vmem:[#allocation8 + $0x88] sm:$0xf0] }
  0xf0   :  { %v3859_v13 = vld [vmem:[#allocation8 + $0x124] sm:$0xf] }
  0xf2   :  { %2120 = vmatpush.bf16.msrb.mxu1 %v3382_v29  ;;  %2108 = vmatpush.bf16.msra.mxu3 %v3310_v34  ;;  %v1445_v15 = vpop.f32.mrf.mxu3  ;;  %v1444_v29 = vadd.f32 %v1443_v35, %v329_v22  ;;  %v3462_v34 = vor.u32 %v3870_v32, %v3461_v28  ;;  %v3860_v22 = vld [vmem:[#allocation8 + $0x124] sm:$0xf0] }
  0xf3   :  { %v1458_v20 = vpop.f32.mrf.mxu2  ;;  %v3823_v15 = vld [vmem:[#allocation8 + $0x4] sm:$0xf] }
  0xf4   :  { %2131 = vmatpush.bf16.msrb.mxu2 %v3462_v34  ;;  %v1457_v3 = vadd.f32 %v1456_v57, %v1444_v29  ;;  %v3430_v20 = vor.u32 %v3862_v17, %v3429_v16  ;;  %v3413_v29 = vld [vmem:[#allocation8 + $0x110] sm:$0xf]  ;;  %v3878_v17 = vld [vmem:[#allocation8 + $0x1b4] sm:$0xf0] }
  0xf5   :  { %3274 = vmatmul.msk.bf16.vlgmr.msra.gmra.mxu1 %vm1340_vm0, %v3940_v52  ;;  %v3445_v52 = vld [vmem:[#allocation8 + $0x150] sm:$0xf]  ;;  %v3414_v36 = vor.u32 %v3858_v2, %v3413_v29  ;;  %v3407_v29 = vld [vmem:[#allocation8 + $0x108] sm:$0xf0] }
  0xf6   :  { %2121 = vmatpush.bf16.msrb.mxu1 %v3374_v40  ;;  %2109 = vmatpush.bf16.msra.mxu3 %v3302_v45  ;;  %v3375_v40 = vld [vmem:[#allocation8 + $0xc8] sm:$0xf0]  ;;  %v3453_v45 = vld [vmem:[#allocation8 + $0x160] sm:$0xf]  ;;  %v3446_v35 = vor.u32 %v3866_v53, %v3445_v52  ;;  %v3447_v53 = vld [vmem:[#allocation8 + $0x158] sm:$0xf0] }
  0xf7   :  { %v3378_v47 = vor.u32 %v3847_v39, %v3375_v40  ;;  %v3856_v39 = vld [vmem:[#allocation8 + $0x104] sm:$0xf0]  ;;  %v3493_v16 = vld [vmem:[#allocation8 + $0x1b0] sm:$0xf] }
  0xfa   :  { %2122 = vmatpush.bf16.msrb.mxu1 %v3366_v48  ;;  %2110 = vmatpush.bf16.msra.mxu3 %v3294_v51  ;;  %v3454_v48 = vor.u32 %v3868_v23, %v3453_v45  ;;  %v3367_v51 = vld [vmem:[#allocation8 + $0xb8] sm:$0xf0] }
  0xfb   :  { %v3463_v45 = vld [vmem:[#allocation8 + $0x178] sm:$0xf0] }
  0xfc   :  { %2132 = vmatpush.bf16.msrb.mxu2 %v3454_v48  ;;  %v3466_v23 = vor.u32 %v3869_v43, %v3463_v45  ;;  %v3885_v43 = vld [vmem:[#allocation8 + $0x1f4] sm:$0xf]  ;;  %v3527_v45 = vld [vmem:[#allocation8 + $0x1f8] sm:$0xf0] }
  0xfe   :  { %2123 = vmatpush.bf16.msrb.mxu1 %v3358_v56  ;;  %2111 = vmatpush.bf16.msra.mxu3 %v3286_v60  ;;  %v3370_v56 = vor.u32 %v3845_v50, %v3367_v51  ;;  %v3298_v60 = vor.u32 %v3827_v54, %v3295_v63  ;;  %v3525_v50 = vld [vmem:[#allocation8 + $0x1f0] sm:$0xf]  ;;  %v3886_v51 = vld [vmem:[#allocation8 + $0x1f4] sm:$0xf0]  ;;  %v3517_v63 = vld [vmem:[#allocation8 + $0x1e0] sm:$0xf] }
 0x100   :  { %2133 = vmatpush.bf16.msrb.mxu2 %v3446_v35  ;;  %v3884_v35 = vld [vmem:[#allocation8 + $0x1e4] sm:$0xf0] }
 0x101   :  { %v1469_v46 = vpop.f32.mrf.mxu0 }
 0x102   :  { %2124 = vmatpush.bf16.msrb.mxu1 %v3350_v5  ;;  %2112 = vmatpush.bf16.msra.mxu3 %v3278_v10  ;;  %v1470_v49 = vadd.f32 %v1469_v46, %v1457_v3  ;;  %v3405_v3 = vld [vmem:[#allocation8 + $0x100] sm:$0xf]  ;;  %v3867_v46 = vld [vmem:[#allocation8 + $0x164] sm:$0xf] }
 0x104   :  { %v1482_v55 = vpop.f32.mrf.mxu1  ;;  %2134 = vmatpush.bf16.msrb.mxu2 %v3438_v9 }
 0x105   :  { %2113 = vmatmul.bf16.vlgmr.msra.gmra.mxu3 %v4259_v24  ;;  %v1483_v57 = vadd.f32 %v1482_v55, %v1470_v49  ;;  %v3863_v55 = vld [vmem:[#allocation8 + $0x144] sm:$0xf] }
 0x106   :  { %2157 = vmatpush.bf16.msrb.mxu3 %v3338_v14  ;;  %2125 = vmatpush.bf16.msrb.mxu1 %v3342_v19  ;;  %v3290_v14 = vor.u32 %v3825_v61, %v3287_v62  ;;  %v3279_v19 = vld [vmem:[#allocation8 + $0x8] sm:$0xf0]  ;;  %v3442_v59 = vor.u32 %v3863_v55, %v3439_v58  ;;  %v3509_v61 = vld [vmem:[#allocation8 + $0x1d0] sm:$0xf]  ;;  %v3882_v62 = vld [vmem:[#allocation8 + $0x1d4] sm:$0xf0] }
 0x108   :  { %v1495_v5 = vpop.f32.mrf.mxu3  ;;  %2135 = vmatpush.bf16.msrb.mxu2 %v3430_v20  ;;  %v3857_v20 = vld [vmem:[#allocation8 + $0x114] sm:$0xf] }
 0x109   :  { %v1471_v4 = vpop.f32.mrf.mxu0  ;;  %v1496_v10 = vadd.f32 %v1495_v5, %v1483_v57  ;;  %v3518_v57 = vor.u32 %v3884_v35, %v3517_v63  ;;  %v3510_v5 = vor.u32 %v3882_v62, %v3509_v61  ;;  %v3881_v63 = vld [vmem:[#allocation8 + $0x1d4] sm:$0xf]  ;;  %v3511_v35 = vld [vmem:[#allocation8 + $0x1d8] sm:$0xf0]  ;;  %v3503_v61 = vld [vmem:[#allocation8 + $0x1c8] sm:$0xf0] }
 0x10a   :  { %2170 = vmatpush.bf16.msra.mxu1 %v3402_v21  ;;  %2158 = vmatpush.bf16.msrb.mxu3 %v3330_v7  ;;  %v3421_v21 = vld [vmem:[#allocation8 + $0x120] sm:$0xf] }
 0x10b   :  { %v1508_v11 = vpop.f32.mrf.mxu2  ;;  %v3422_v28 = vor.u32 %v3860_v22, %v3421_v21  ;;  %v3415_v21 = vld [vmem:[#allocation8 + $0x118] sm:$0xf0]  ;;  %v330_v22 = vperm.slane %v4250_v37, 2 }
 0x10c   :  { %v1484_v44 = vpop.f32.mrf.mxu1  ;;  %v1509_v7 = vadd.f32 %v1508_v11, %v1496_v10  ;;  %v3501_v10 = vld [vmem:[#allocation8 + $0x1c0] sm:$0xf]  ;;  %v3880_v11 = vld [vmem:[#allocation8 + $0x1c4] sm:$0xf0] }
 0x10d   :  { %2136 = vmatpush.bf16.msrb.mxu2 %v3422_v28  ;;  %v3502_v12 = vor.u32 %v3880_v11, %v3501_v10  ;;  %v3494_v44 = vor.u32 %v3878_v17, %v3493_v16  ;;  %v3855_v28 = vld [vmem:[#allocation8 + $0x104] sm:$0xf]  ;;  %v331_v11 = vperm.slane %v4250_v37, 3 }
 0x10e   :  { %2171 = vmatpush.bf16.msra.mxu1 %v3394_v27  ;;  %2159 = vmatpush.bf16.msrb.mxu3 %v3322_v33  ;;  %v3282_v27 = vor.u32 %v3823_v15, %v3279_v19  ;;  %v3346_v33 = vor.u32 %v3839_v25, %v3343_v26  ;;  %v3485_v25 = vld [vmem:[#allocation8 + $0x1a0] sm:$0xf]  ;;  %v3876_v26 = vld [vmem:[#allocation8 + $0x1a4] sm:$0xf0] }
 0x110   :  { %v1497_v32 = vpop.f32.mrf.mxu3 }
 0x111   :  { %v1521_v31 = vpop.f32.mrf.mxu0  ;;  %2137 = vmatpush.bf16.msrb.mxu2 %v3414_v36  ;;  %v3410_v32 = vor.u32 %v3855_v28, %v3407_v29  ;;  %v3874_v36 = vld [vmem:[#allocation8 + $0x194] sm:$0xf0] }
 0x112   :  { %2172 = vmatpush.bf16.msra.mxu1 %v3386_v38  ;;  %2160 = vmatpush.bf16.msrb.mxu3 %v3314_v41  ;;  %v1522_v34 = vadd.f32 %v1521_v31, %v1509_v7  ;;  %v3406_v41 = vor.u32 %v3856_v39, %v3405_v3  ;;  %v3418_v7 = vor.u32 %v3857_v20, %v3415_v21  ;;  %v3471_v20 = vld [vmem:[#allocation8 + $0x188] sm:$0xf0] }
 0x113   :  { %v1510_v18 = vpop.f32.mrf.mxu2  ;;  %v3486_v31 = vor.u32 %v3876_v26, %v3485_v25 }
 0x114   :  { %v1708_v38 = vmax.f32 %v1522_v34, 0.0  ;;  %v3477_v18 = vld [vmem:[#allocation8 + $0x190] sm:$0xf] }
 0x115   :  { %2138 = vmatpush.bf16.msrb.mxu2 %v3406_v41  ;;  %v3872_v41 = vld [vmem:[#allocation8 + $0x184] sm:$0xf0] }
 0x116   :  { %2173 = vmatpush.bf16.msra.mxu1 %v3378_v47  ;;  %2161 = vmatpush.bf16.msrb.mxu3 %v3306_v30  ;;  %v1712_v40 = vpack.c.bf16 %v1708_v38, %v1708_v38  ;;  %v3455_v47 = vld [vmem:[#allocation8 + $0x168] sm:$0xf0]  ;;  %v3865_v30 = vld [vmem:[#allocation8 + $0x154] sm:$0xf]  ;;  %v3478_v38 = vor.u32 %v3874_v36, %v3477_v18 }
 0x117   :  { %v3458_v48 = vor.u32 %v3867_v46, %v3455_v47  ;;  %v3450_v54 = vor.u32 %v3865_v30, %v3447_v53  ;;  %v3530_v46 = vor.u32 %v3885_v43, %v3527_v45  ;;  %v3519_v30 = vld [vmem:[#allocation8 + $0x1e8] sm:$0xf0] }
 0x118   :  { %2126 = vmatmul.bf16.vlgmr.msrb.gmra.mxu1 %v1712_v40 }
 0x119   :  { %v1523_v42 = vpop.f32.mrf.mxu0  ;;  %2183 = vmatpush.bf16.msra.mxu2 %v3466_v23 }
 0x11a   :  { %2174 = vmatpush.bf16.msra.mxu1 %v3370_v56  ;;  %2162 = vmatpush.bf16.msrb.mxu3 %v3298_v60 }
 0x11d   :  { %2184 = vmatpush.bf16.msra.mxu2 %v3458_v48 }
 0x11e   :  { %2175 = vmatpush.bf16.msra.mxu1 %v3362_v8  ;;  %2163 = vmatpush.bf16.msrb.mxu3 %v3290_v14  ;;  %v3431_v8 = vld [vmem:[#allocation8 + $0x138] sm:$0xf0]  ;;  %v3423_v14 = vld [vmem:[#allocation8 + $0x128] sm:$0xf0] }
 0x11f   :  { %v3434_v9 = vor.u32 %v3861_v0, %v3431_v8  ;;  %v3426_v15 = vor.u32 %v3859_v13, %v3423_v14  ;;  %v3875_v8 = vld [vmem:[#allocation8 + $0x1a4] sm:$0xf]  ;;  %v3479_v13 = vld [vmem:[#allocation8 + $0x198] sm:$0xf0] }
 0x121   :  { %2185 = vmatpush.bf16.msra.mxu2 %v3450_v54 }
 0x122   :  { %2176 = vmatpush.bf16.msra.mxu1 %v3354_v6  ;;  %2164 = vmatpush.bf16.msrb.mxu3 %v3282_v27 }
 0x124   :  { %v1534_v52 = vpop.f32.mrf.mxu1 }
 0x125   :  { %2165 = vmatmul.bf16.vlgmr.msrb.gmra.mxu3 %v4259_v24  ;;  %v4263_v49 = vpop.f32.mrf.mxu0  ;;  %v3526_v24 = vor.u32 %v3886_v51, %v3525_v50  ;;  %2186 = vmatpush.bf16.msra.mxu2 %v3442_v59  ;;  %v1535_v2 = vadd.f32 %v1534_v52, %v330_v22  ;;  %v3883_v51 = vld [vmem:[#allocation8 + $0x1e4] sm:$0xf] }
 0x126   :  { %2177 = vmatpush.bf16.msra.mxu1 %v3346_v33  ;;  %v3522_v53 = vor.u32 %v3883_v51, %v3519_v30  ;;  %v3894_v30 = vld [vmem:[#allocation10 + $0x38] sm:$0xff] }
 0x127   :  { %2144 = vmatpush.bf16.msra.mxu0 %v3526_v24  ;;  %2345 = vmatpush.bf16.msra.mxu3 %v3894_v30 }
 0x128   :  { %v1547_v56 = vpop.f32.mrf.mxu3 }
 0x129   :  { %2178 = vmatmul.bf16.vlgmr.msra.gmra.mxu1 %v1712_v40  ;;  %2187 = vmatpush.bf16.msra.mxu2 %v3434_v9  ;;  %v1548_v33 = vadd.f32 %v1547_v56, %v1535_v2  ;;  %v3469_v40 = vld [vmem:[#allocation8 + $0x180] sm:$0xf]  ;;  %v3514_v56 = vor.u32 %v3881_v63, %v3511_v35  ;;  %v3487_v9 = vld [vmem:[#allocation8 + $0x1a8] sm:$0xf0]  ;;  %v3889_v63 = vld [vmem:[#allocation10 + $0x10] sm:$0xff] }
 0x12a   :  { %v3470_v42 = vor.u32 %v3872_v41, %v3469_v40  ;;  %v3490_v10 = vor.u32 %v3875_v8, %v3487_v9  ;;  %v3901_v35 = vld [vmem:[#allocation10 + $0x70] sm:$0xff] }
 0x12b   :  { %2145 = vmatpush.bf16.msra.mxu0 %v3518_v57  ;;  %v1573_v1 = vpop.f32.mrf.mxu2  ;;  %v1561_v3 = vadd.f32 %v4263_v49, %v1548_v33  ;;  %v3909_v9 = vld [vmem:[#allocation11 + $0x30] sm:$0xff] }
 0x12c   :  { %v1536_v4 = vpop.f32.mrf.mxu1 }
 0x12d   :  { %v1562_v60 = vpop.f32.mrf.mxu0  ;;  %2188 = vmatpush.bf16.msra.mxu2 %v3426_v15  ;;  %v1574_v23 = vadd.f32 %v1573_v1, %v1561_v3  ;;  %v3877_v1 = vld [vmem:[#allocation8 + $0x1b4] sm:$0xf]  ;;  %v3495_v4 = vld [vmem:[#allocation8 + $0x1b8] sm:$0xf0]  ;;  %v1779_v3 = vld [vmem:[%s4284_s4] sm:$0x3] }
 0x12e   :  { %v3879_v60 = vld [vmem:[#allocation8 + $0x1c4] sm:$0xf] }
 0x12f   :  { %2146 = vmatpush.bf16.msra.mxu0 %v3510_v5  ;;  %v3506_v62 = vor.u32 %v3879_v60, %v3503_v61  ;;  %v3498_v5 = vor.u32 %v3877_v1, %v3495_v4  ;;  %v3898_v60 = vld [vmem:[#allocation10 + $0x58] sm:$0xff]  ;;  %v3897_v61 = vld [vmem:[#allocation10 + $0x50] sm:$0xff]  ;;  %v3895_v4 = vld [vmem:[#allocation10 + $0x40] sm:$0xff] }
 0x130   :  { %v1549_v19 = vpop.f32.mrf.mxu3 }
 0x131   :  { %2189 = vmatpush.bf16.msra.mxu2 %v3418_v7  ;;  %v3871_v19 = vld [vmem:[#allocation8 + $0x184] sm:$0xf] }
 0x132   :  { %v3474_v21 = vor.u32 %v3871_v19, %v3471_v20 }
 0x133   :  { %2147 = vmatpush.bf16.msra.mxu0 %v3502_v12  ;;  %v1575_v27 = vpop.f32.mrf.mxu2  ;;  %v3873_v12 = vld [vmem:[#allocation8 + $0x194] sm:$0xf] }
 0x134   :  { %v3482_v14 = vor.u32 %v3873_v12, %v3479_v13 }
 0x135   :  { %v1612_v6 = vpop.f32.mrf.mxu0  ;;  %2190 = vmatpush.bf16.msra.mxu2 %v3410_v32 }
 0x137   :  { %2148 = vmatpush.bf16.msra.mxu0 %v3494_v44 }
 0x13b   :  { %2149 = vmatpush.bf16.msra.mxu0 %v3486_v31 }
 0x13d   :  { %v1614_v34 = vpop.f32.mrf.mxu0 }
 0x13f   :  { %2150 = vmatpush.bf16.msra.mxu0 %v3478_v38 }
 0x142   :  { %v1586_v39 = vpop.f32.mrf.mxu1 }
 0x143   :  { %2151 = vmatpush.bf16.msra.mxu0 %v3470_v42  ;;  %v1587_v47 = vadd.f32 %v1586_v39, %v1574_v23  ;;  %v1781_v39 = vperm.slane %v1779_v3, 0  ;;  %v1782_v23 = vperm.slane %v1779_v3, 1 }
 0x147   :  { %2196 = vmatpush.bf16.msrb.mxu0 %v3530_v46 }
 0x149   :  { %v1638_v48 = vpop.f32.mrf.mxu0 }
 0x14a   :  { %v1599_v50 = vpop.f32.mrf.mxu3  ;;  %v1588_v24 = vpop.f32.mrf.mxu1 }
 0x14b   :  { %v1600_v52 = vadd.f32 %v1599_v50, %v1587_v47  ;;  %v1625_v54 = vpop.f32.mrf.mxu2  ;;  %2197 = vmatpush.bf16.msrb.mxu0 %v3522_v53  ;;  %v3892_v24 = vld [vmem:[#allocation10 + $0x28] sm:$0xff]  ;;  %v3891_v53 = vld [vmem:[#allocation10 + $0x20] sm:$0xff] }
 0x14c   :  { %v1626_v15 = vadd.f32 %v1625_v54, %v331_v11  ;;  %v3890_v54 = vld [vmem:[#allocation10 + $0x18] sm:$0xff] }
 0x14d   :  { %v1613_v49 = vadd.f32 %v1612_v6, %v1600_v52  ;;  %v3893_v52 = vld [vmem:[#allocation10 + $0x30] sm:$0xff] }
 0x14e   :  { %v1639_v17 = vadd.f32 %v1638_v48, %v1626_v15  ;;  %2346 = vmatpush.bf16.msra.mxu3 %v3893_v52 }
 0x14f   :  { %v1709_v55 = vmax.f32 %v1613_v49, 0.0  ;;  %2198 = vmatpush.bf16.msrb.mxu0 %v3514_v56  ;;  %v3902_v49 = vld [vmem:[#allocation10 + $0x78] sm:$0xff]  ;;  %v3900_v56 = vld [vmem:[#allocation10 + $0x68] sm:$0xff] }
 0x150   :  { %2358 = vmatpush.bf16.msrb.mxu1 %v3902_v49 }
 0x151   :  { %v1713_v57 = vpack.c.bf16 %v1709_v55, %v1709_v55  ;;  %v1640_v58 = vpop.f32.mrf.mxu0  ;;  %v3888_v55 = vld [vmem:[#allocation10 + $0x8] sm:$0xff] }
 0x152   :  { %v1601_v59 = vpop.f32.mrf.mxu3  ;;  %2347 = vmatpush.bf16.msra.mxu3 %v3892_v24  ;;  %v3887_v58 = vld [vmem:[#allocation10] sm:$0xff] }
 0x153   :  { %2139 = vmatmul.bf16.vlgmr.msrb.gmra.mxu2 %v1713_v57  ;;  %v1627_v0 = vpop.f32.mrf.mxu2  ;;  %2199 = vmatpush.bf16.msrb.mxu0 %v3506_v62  ;;  %v3899_v59 = vld [vmem:[#allocation10 + $0x60] sm:$0xff] }
 0x154   :  { %2359 = vmatpush.bf16.msrb.mxu1 %v3901_v35  ;;  %v3896_v0 = vld [vmem:[#allocation10 + $0x48] sm:$0xff] }
 0x156   :  { %2348 = vmatpush.bf16.msra.mxu3 %v3891_v53 }
 0x157   :  { %2200 = vmatpush.bf16.msrb.mxu0 %v3498_v5  ;;  %v3910_v5 = vld [vmem:[#allocation11 + $0x38] sm:$0xff] }
 0x158   :  { %2360 = vmatpush.bf16.msrb.mxu1 %v3900_v56  ;;  %2441 = vmatpush.bf16.msrb.mxu2 %v3910_v5 }
 0x15a   :  { %2349 = vmatpush.bf16.msra.mxu3 %v3890_v54 }
 0x15b   :  { %2201 = vmatpush.bf16.msrb.mxu0 %v3490_v10  ;;  %v3908_v10 = vld [vmem:[#allocation11 + $0x28] sm:$0xff] }
 0x15c   :  { %2361 = vmatpush.bf16.msrb.mxu1 %v3899_v59  ;;  %2442 = vmatpush.bf16.msrb.mxu2 %v3909_v9 }
 0x15e   :  { %2350 = vmatpush.bf16.msra.mxu3 %v3889_v63 }
 0x15f   :  { %2202 = vmatpush.bf16.msrb.mxu0 %v3482_v14  ;;  %v3907_v14 = vld [vmem:[#allocation11 + $0x20] sm:$0xff] }
 0x160   :  { %2362 = vmatpush.bf16.msrb.mxu1 %v3898_v60  ;;  %2443 = vmatpush.bf16.msrb.mxu2 %v3908_v10 }
 0x162   :  { %v1651_v16 = vpop.f32.mrf.mxu1  ;;  %2351 = vmatpush.bf16.msra.mxu3 %v3888_v55 }
 0x163   :  { %2191 = vmatmul.bf16.vlgmr.msra.gmra.mxu2 %v1713_v57  ;;  %2203 = vmatpush.bf16.msrb.mxu0 %v3474_v21  ;;  %v1652_v22 = vadd.f32 %v1651_v16, %v1639_v17 }
 0x164   :  { %2363 = vmatpush.bf16.msrb.mxu1 %v3897_v61  ;;  %2444 = vmatpush.bf16.msrb.mxu2 %v3907_v14 }
 0x166   :  { %2352 = vmatpush.bf16.msra.mxu3 %v3887_v58 }
 0x168   :  { %v1690_v6 = vpop.f32.mrf.mxu0  ;;  %2364 = vmatpush.bf16.msrb.mxu1 %v3896_v0 }
 0x16a   :  { %v1664_v44 = vpop.f32.mrf.mxu3  ;;  %v1653_v25 = vpop.f32.mrf.mxu1 }
 0x16b   :  { %v1665_v7 = vadd.f32 %v1664_v44, %v1652_v22  ;;  %v1677_v26 = vpop.f32.mrf.mxu2  ;;  %v3905_v25 = vld [vmem:[#allocation11 + $0x10] sm:$0xff] }
 0x16c   :  { %2365 = vmatpush.bf16.msrb.mxu1 %v3895_v4 }
 0x16d   :  { %v1678_v37 = vadd.f32 %v1677_v26, %v1665_v7  ;;  %v3906_v7 = vld [vmem:[#allocation11 + $0x18] sm:$0xff]  ;;  %v3904_v26 = vld [vmem:[#allocation11 + $0x8] sm:$0xff] }
 0x16e   :  { %2445 = vmatpush.bf16.msrb.mxu2 %v3906_v7 }
 0x16f   :  { %v1691_v29 = vadd.f32 %v1690_v6, %v1678_v37  ;;  %v3903_v37 = vld [vmem:[#allocation11] sm:$0xff] }
 0x170   :  { %v1692_v28 = vpop.f32.mrf.mxu0 }
 0x171   :  { %v3928_v28 = vld [vmem:[%s4286_s6] ss:$0 sm:$0xff] }
 0x172   :  { %v1666_v27 = vpop.f32.mrf.mxu3  ;;  %v1703_v2 = vpop.f32.mrf.mxu1  ;;  %2446 = vmatpush.bf16.msrb.mxu2 %v3905_v25 }
 0x173   :  { %v1704_v31 = vadd.f32 %v1703_v2, %v1691_v29  ;;  %v1679_v32 = vpop.f32.mrf.mxu2 }
 0x175   :  { %v1710_v33 = vmax.f32 %v1704_v31, 0.0 }
 0x176   :  { %2447 = vmatpush.bf16.msrb.mxu2 %v3904_v26 }
 0x177   :  { %v1714_v34 = vpack.c.bf16 %v1710_v33, %v1710_v33 }
 0x179   :  { %2152 = vmatmul.bf16.vlgmr.msra.gmra.mxu0 %v1714_v34 }
 0x17a   :  { %v1705_v18 = vpop.f32.mrf.mxu1  ;;  %2448 = vmatpush.bf16.msrb.mxu2 %v3903_v37 }
 0x188   :  { %v2114_v36 = vpop.f32.mrf.mxu3 }
 0x189   :  { %2204 = vmatmul.bf16.vlgmr.msrb.gmra.mxu0 %v1714_v34  ;;  %v2115_v40 = vadd.f32 %v2114_v36, %v1781_v39  ;;  %v3929_v36 = vld [vmem:[%s4288_s8] ss:$0 sm:$0xff] }
 0x190   :  { %v2116_v38 = vpop.f32.mrf.mxu3 }
 0x195   :  { %v2127_v41 = vpop.f32.mrf.mxu1 }
 0x196   :  { %v2128_v42 = vadd.f32 %v2127_v41, %v2115_v40 }
 0x19d   :  { %v2129_v45 = vpop.f32.mrf.mxu1 }
 0x1a6   :  { %v2179_v48 = vpop.f32.mrf.mxu1 }
 0x1a8   :  { %v2166_v43 = vpop.f32.mrf.mxu3 }
 0x1a9   :  { %v2167_v47 = vadd.f32 %v2166_v43, %v1782_v23 }
 0x1ab   :  { %v2180_v50 = vadd.f32 %v2179_v48, %v2167_v47 }
 0x1ae   :  { %v2181_v51 = vpop.f32.mrf.mxu1 }
 0x1b0   :  { %v2168_v46 = vpop.f32.mrf.mxu3 }
 0x1d6   :  { %v2140_v57 = vpop.f32.mrf.mxu2 }
 0x1d7   :  { %v2141_v11 = vadd.f32 %v2140_v57, %v2128_v42 }
 0x1de   :  { %v2142_v62 = vpop.f32.mrf.mxu2 }
 0x1e6   :  { %v2192_v1 = vpop.f32.mrf.mxu2 }
 0x1e7   :  { %v2193_v19 = vadd.f32 %v2192_v1, %v2180_v50 }
 0x1ee   :  { %v2194_v8 = vpop.f32.mrf.mxu2 }
 0x1f6   :  { %v2153_v12 = vpop.f32.mrf.mxu0 }
 0x1f7   :  { %v2154_v13 = vadd.f32 %v2153_v12, %v2141_v11 }
 0x1f9   :  { %v2209_v15 = vmax.f32 %v2154_v13, 0.0 }
 0x1fb   :  { %v2211_v16 = vpack.c.bf16 %v2209_v15, %v2209_v15 }
 0x1fd   :  { %2353 = vmatmul.bf16.vlgmr.msra.gmra.mxu3 %v2211_v16 }
 0x1fe   :  { %v2155_v17 = vpop.f32.mrf.mxu0 }
 0x206   :  { %v2205_v20 = vpop.f32.mrf.mxu0 }
 0x207   :  { %v2206_v21 = vadd.f32 %v2205_v20, %v2193_v19 }
 0x209   :  { %v2210_v22 = vmax.f32 %v2206_v21, 0.0 }
 0x20b   :  { %v2212_v44 = vpack.c.bf16 %v2210_v22, %v2210_v22 }
 0x20d   :  { %2366 = vmatmul.bf16.vlgmr.msrb.gmra.mxu1 %v2212_v44 }
 0x20e   :  { %v2207_v6 = vpop.f32.mrf.mxu0 }
 0x280   :  { %v2354_v27 = vpop.f32.mrf.mxu3 }
 0x281   :  { %v2355_v2 = vadd.f32 %v3928_v28, %v2354_v27 }
 0x288   :  { %v2356_v29 = vpop.f32.mrf.mxu3 }
 0x28a   :  { %v2367_v31 = vpop.f32.mrf.mxu1 }
 0x28b   :  { %v2368_v32 = vadd.f32 %v2367_v31, %v2355_v2 }
 0x28d   :  { %v2371_v33 = vmax.f32 %v2368_v32, 0.0 }
 0x28f   :  { %v2372_v34 = vpack.c.bf16 %v2371_v33, %v2371_v33 }
 0x291   :  { %2449 = vmatmul.bf16.vlgmr.msrb.gmra.mxu2 %v2372_v34 }
 0x292   :  { %v2369_v18 = vpop.f32.mrf.mxu1 }
 0x314   :  { %v2450_v38 = vpop.f32.mrf.mxu2 }
 0x315   :  { %v2451_v3 = vadd.f32 %v3929_v36, %v2450_v38 }
 0x317   :  { %2454 = vmax.xlane.f32.xlu0 %v2451_v3 }
 0x31c   :  { %v2452_v39 = vpop.f32.mrf.mxu2 }
 0x38a   :  { %v2455_v40 = vpop.xlane.xlu0 %2454 }
 0x38b   :  { %v2456_v41 = vsub.f32 %v2451_v3, %v2455_v40 }
 0x38d   :  { %v2457_v42 = vmul.f32 1.442695, %v2456_v41 }
 0x38f   :  { %3930 = vpow2.f32 %v2457_v42 }
 0x395   :  { %v3931_v43 = vpop.eup %3930 }
 0x396   :  { %2459 = vadd.xlane.f32.xlu0 %v3931_v43 }
 0x409   :  { %v2460_v45 = vpop.xlane.xlu0 %2459 }
 0x40a   :  { %3932 = vlog2.f32 %v2460_v45 }
 0x410   :  { %v3933_v23 = vpop.eup %3932 }
 0x411   :  { %v2462_v46 = vmul.f32 0.6931472, %v3933_v23 }
 0x413   :  { %v2463_v47 = vsub.f32 %v2456_v41, %v2462_v46 }
 0x415   :  { %2464 = vst [vmem:[#allocation13] sm:$0xff] %v2463_v47 }
 0x416   :  { %2468 = vsyncadd [#allocation4], 96  ;;  %s2471_s8 = sshll.u32 %s4289_s9, 4  ;;  %s4133_s25 = smov [#allocation13]   ;;  %s2472_s8 = int_to_ptr.hbm [resolvable:$true] %s2471_s8 }
 0x417   :  { %s2469_s26 = sshll.u32 %s4133_s25, 4  ;;  %s4134_s27 = smov 32   ;;  %s2470_s26 = int_to_ptr.vmem [resolvable:$true] %s2469_s26 }
 0x418   :  { %s4135_s3 = smov 2  }
 0x419   :  { %2477 = dma.vmem_to_hbm [thread:$0]  %s2470_s26, 32, %s2472_s8, [#allocation4], %s4134_s27, %s4134_s27, %s4135_s3  }
 0x41a   :  { %4117 = dma.done.wait [#allocation4], 128  }
 0x41b   :  { %4118 = vsyncadd [#allocation4], 4294967168 }
 0x41c   :  { %2482 = vsyncpa [#allocation3], 1 }
 0x41d   :  { %2483 = vsyncpa [#allocation6], 1 }
 0x41e   :  { %2484 = vsyncpa [#allocation9], 1 }
 0x41f   :  { %2485 = vsyncpa [#allocation12], 1 }
 0x420   :  { %2486 = vsyncpa [#allocation4], 1 }

</bundles_post_ra>
